<compile_context>
chip_gen: v6e
topology: v6e:2x2x1
jax: 0.10.0
libtpu: 0.0.40
codegen_flags: <defaults>
</compile_context>

<pallas_src>
import functools

import jax
import jax.numpy as jnp
from jax.experimental import pallas as pl
from jax.experimental.pallas import tpu as pltpu

NUM_GROUPS = 16
EPS = 1e-5

# MXU operand dtype.  Keep f32 for strict 1e-4 parity with the f32 reference;
# switch to jnp.bfloat16 on v6e/v7x when a looser tolerance is acceptable.
MXU_DTYPE = jnp.float32


def _mxu(v):
    return v if v.dtype == MXU_DTYPE else v.astype(MXU_DTYPE)


def _gn_elu(y, p_mat, gamma, beta, B, M, C):
    """GroupNorm + ELU on a (B*M, C) tile; statistics are per sample.

    p_mat : (C, C) hoisted group-averaging matrix,
            P[i, j] = [group(i) == group(j)] / (M * channels_per_group)
    gamma, beta : (1, C)
    """
    yb = y.reshape(B, M, C)
    s1 = jnp.sum(yb, axis=1)                               # (B, C)
    s2 = jnp.sum(yb * yb, axis=1)                          # (B, C)
    stats = jnp.dot(jnp.concatenate([s1, s2], axis=0), p_mat,
                    preferred_element_type=jnp.float32)    # (2B, C)
    mean = stats[0:B, :]                                   # group mean
    var = stats[B:2 * B, :] - mean * mean                  # E[y^2] - mean^2
    scale = gamma * jax.lax.rsqrt(var + EPS)               # (B, C)
    shift = beta - mean * scale                            # (B, C)
    yn = (yb * scale[:, None, :] + shift[:, None, :]).reshape(B * M, C)
    # ELU(alpha=1); clamp the exp argument so the unselected branch stays finite.
    return jnp.where(yn > 0, yn, jnp.exp(jnp.minimum(yn, 0.0)) - 1.0)


# ------------------------------ fused kernel -------------------------------- #
def fused_residual_conv_kernel(xph_ref, w1_ref, w2_ref, w3_ref, p_ref, vec_ref,
                               o_ref, x1s_ref, x2s_ref, y1p_ref,
                               *, stride, B, Ho, Wo, Ha, Cin, Cout):
    """B samples: conv1+GN+ELU -> conv2+GN+ELU -> 1x1 shortcut + GN + ELU.

    xph_ref : (B, s*s*Ha, Wa, Cin)  phase-split padded input (space-to-depth)
    w1_ref  : (9*Cin, Cout)   w2_ref : (9*Cout, Cout)   w3_ref : (Cin, Cout)
    p_ref   : (Cout, Cout)    vec_ref: (9, Cout) = [b1,g1,bt1,b2,g2,bt2,b3,g3,bt3]
    o_ref   : (B, Cout, Ho*Wo)   (channel-major, NCHW-native)
    x1s_ref : VMEM (B*M, 9*Cin)   x2s_ref : VMEM (B*M, 9*Cout)
    y1p_ref : VMEM (B, Ho+2, Wo+2, Cout)
    """
    M = Ho * Wo
    BM = B * M
    p_mat = p_ref[...]

    def x_window(dh, dw):
        # padded-input pixel (s*ho + dh, s*wo + dw) lives at phase (dh%s, dw%s),
        # spatial (ho + dh//s, wo + dw//s): a contiguous (unstrided) slice.
        phase = (dh % stride) * stride + (dw % stride)
        r0 = phase * Ha + dh // stride
        c0 = dw // stride
        return xph_ref[:, r0:r0 + Ho, c0:c0 + Wo, :].reshape(BM, Cin)

    # ---- conv1: pack 9 taps into one (BM, 9*Cin) operand, single matmul ----- #
    x_center = None
    for dh in range(3):
        for dw in range(3):
            t = dh * 3 + dw
            win = x_window(dh, dw)
            if t == 4:
                x_center = win                 # reused by the 1x1 shortcut
            x1s_ref[:, t * Cin:(t + 1) * Cin] = win
    acc1 = jnp.dot(_mxu(x1s_ref[...]), _mxu(w1_ref[...]),
                   preferred_element_type=jnp.float32)
    y1 = _gn_elu(acc1 + vec_ref[0:1, :], p_mat, vec_ref[1:2, :], vec_ref[2:3, :],
                 B, M, Cout)

    # ---- conv2: stage y1 with a zero border, pack 9 taps, single matmul ----- #
    # Only the 1-pixel border is zeroed (the interior is fully overwritten);
    # re-zero every step so the kernel is correct under any megacore
    # partitioning of the grid.
    y1p_ref[:, 0:1, :, :] = jnp.zeros((B, 1, Wo + 2, Cout), jnp.float32)
    y1p_ref[:, Ho + 1:Ho + 2, :, :] = jnp.zeros((B, 1, Wo + 2, Cout), jnp.float32)
    y1p_ref[:, :, 0:1, :] = jnp.zeros((B, Ho + 2, 1, Cout), jnp.float32)
    y1p_ref[:, :, Wo + 1:Wo + 2, :] = jnp.zeros((B, Ho + 2, 1, Cout), jnp.float32)
    y1p_ref[:, 1:Ho + 1, 1:Wo + 1, :] = y1.reshape(B, Ho, Wo, Cout)

    for dh in range(3):
        for dw in range(3):
            t = dh * 3 + dw
            win = y1p_ref[:, dh:dh + Ho, dw:dw + Wo, :].reshape(BM, Cout)
            x2s_ref[:, t * Cout:(t + 1) * Cout] = win
    acc2 = jnp.dot(_mxu(x2s_ref[...]), _mxu(w2_ref[...]),
                   preferred_element_type=jnp.float32)
    y2 = _gn_elu(acc2 + vec_ref[3:4, :], p_mat, vec_ref[4:5, :], vec_ref[5:6, :],
                 B, M, Cout)

    # ---- conv3: 1x1 shortcut (stride s) + residual + GN + ELU --------------- #
    y3 = (jnp.dot(_mxu(x_center), _mxu(w3_ref[...]),
                  preferred_element_type=jnp.float32) + vec_ref[6:7, :])
    out = _gn_elu(y2 + y3, p_mat, vec_ref[7:8, :], vec_ref[8:9, :], B, M, Cout)

    # ---- store channel-major (NCHW-native); lane dim = Ho*Wo ---------------- #
    out3 = out.reshape(B, M, Cout)
    for b in range(B):
        o_ref[b] = out3[b].T                                 # (Cout, M)


# ------------------------------ JAX wrapper --------------------------------- #
def _space_to_depth_pad(x_nhwc, stride):
    """Pad by 1 (for the 3x3 convs) and split into stride phases so every
    in-kernel window read is a contiguous slice.  No data duplication."""
    N, H, W, C = x_nhwc.shape
    xp = jnp.pad(x_nhwc, ((0, 0), (1, 1), (1, 1), (0, 0)))
    Hp, Wp = H + 2, W + 2
    Ha = -(-Hp // stride)
    Wa = -(-Wp // stride)
    xp = jnp.pad(xp, ((0, 0), (0, Ha * stride - Hp), (0, Wa * stride - Wp), (0, 0)))
    xph = xp.reshape(N, Ha, stride, Wa, stride, C)
    xph = jnp.transpose(xph, (0, 2, 4, 1, 3, 5))      # (N, s, s, Ha, Wa, C)
    return xph.reshape(N, stride * stride * Ha, Wa, C), Ha, Wa


def _padded_bytes(shape, itemsize=4):
    s = [int(d) for d in shape]
    if len(s) >= 1:
        s[-1] = -(-s[-1] // 128) * 128
    if len(s) >= 2:
        s[-2] = -(-s[-2] // 8) * 8
    n = 1
    for d in s:
        n *= d
    return n * itemsize


def residual_conv_forward(x_nchw, params, stride, samples_per_block=1):
    x = jnp.transpose(x_nchw, (0, 2, 3, 1)).astype(jnp.float32)    # NHWC
    N, H, W, Cin = x.shape
    Cout = params["vecs"].shape[-1]
    Ho = (H + 2 - 3) // stride + 1
    Wo = (W + 2 - 3) // stride + 1
    M = Ho * Wo

    B = int(samples_per_block)
    assert N % B == 0, (N, B)
    BM = B * M

    xph, Ha, Wa = _space_to_depth_pad(x, stride)

    # (C, C) group-averaging matrix for GroupNorm statistics (hoisted constant).
    cg = Cout // NUM_GROUPS
    ch = jnp.arange(Cout)
    p_mat = ((ch[:, None] // cg) == (ch[None, :] // cg)).astype(jnp.float32)
    p_mat = p_mat / float(M * cg)

    kernel = functools.partial(fused_residual_conv_kernel, stride=stride, B=B,
                               Ho=Ho, Wo=Wo, Ha=Ha, Cin=Cin, Cout=Cout)

    in_blocks = [(B, stride * stride * Ha, Wa, Cin),
                 (9 * Cin, Cout), (9 * Cout, Cout), (Cin, Cout),
                 (Cout, Cout), (9, Cout)]
    out_block = (B, Cout, M)
    scratch_blocks = [(BM, 9 * Cin), (BM, 9 * Cout), (B, Ho + 2, Wo + 2, Cout)]
    vmem_bytes = (2 * sum(_padded_bytes(s) for s in in_blocks)
                  + 2 * _padded_bytes(out_block)
                  + sum(_padded_bytes(s) for s in scratch_blocks)
                  + (8 << 20))                        # headroom for live values
    vmem_limit = int(min(64 << 20, max(32 << 20, vmem_bytes)))

    flops = 2 * N * M * Cout * (9 * Cin + 9 * Cout + Cin) + 12 * N * Cout * Cout
    bytes_accessed = 4 * (xph.size + params["w1"].size + params["w2"].size
                          + params["w3"].size + p_mat.size + params["vecs"].size
                          + N * M * Cout)

    out = pl.pallas_call(
        kernel,
        out_shape=jax.ShapeDtypeStruct((N, Cout, M), jnp.float32),
        grid_spec=pltpu.PrefetchScalarGridSpec(
            num_scalar_prefetch=0,
            grid=(N // B,),
            in_specs=[
                pl.BlockSpec((B, stride * stride * Ha, Wa, Cin),
                             lambda n: (n, 0, 0, 0)),
                pl.BlockSpec((9 * Cin, Cout), lambda n: (0, 0)),
                pl.BlockSpec((9 * Cout, Cout), lambda n: (0, 0)),
                pl.BlockSpec((Cin, Cout), lambda n: (0, 0)),
                pl.BlockSpec((Cout, Cout), lambda n: (0, 0)),
                pl.BlockSpec((9, Cout), lambda n: (0, 0)),
            ],
            out_specs=pl.BlockSpec((B, Cout, M), lambda n: (n, 0, 0)),
            scratch_shapes=[
                pltpu.VMEM((BM, 9 * Cin), jnp.float32),
                pltpu.VMEM((BM, 9 * Cout), jnp.float32),
                pltpu.VMEM((B, Ho + 2, Wo + 2, Cout), jnp.float32),
            ],
        ),
        compiler_params=pltpu.CompilerParams(
            dimension_semantics=("parallel",),
            vmem_limit_bytes=vmem_limit),
        cost_estimate=pl.CostEstimate(
            flops=flops,
            transcendentals=3 * N * M * Cout,
            bytes_accessed=bytes_accessed),
    )(xph, params["w1"], params["w2"], params["w3"], p_mat, params["vecs"])

    # Output is already channel-major: just split HW.  No transpose needed.
    return out.reshape(N, Cout, Ho, Wo)                            # NCHW


def conv3x3_w_to_matrix(w_oihw):
    """(Cout, Cin, 3, 3) -> (9*Cin, Cout), row index = (dh*3 + dw)*Cin + cin."""
    Cout, Cin, kh, kw = w_oihw.shape
    return jnp.transpose(w_oihw, (2, 3, 1, 0)).reshape(kh * kw * Cin, Cout)


# ---------------------------- pure-JAX reference ----------------------------- #
def _ref_conv(x_nchw, w, b, stride, pad):
    y = jax.lax.conv_general_dilated(
        x_nchw, w, (stride, stride), [(pad, pad), (pad, pad)],
        dimension_numbers=("NCHW", "OIHW", "NCHW"))
    return y + b[None, :, None, None]


def _ref_gn(x, gamma, beta, ng=NUM_GROUPS, eps=EPS):
    N, C, H, W = x.shape
    xg = x.reshape(N, ng, (C // ng) * H * W)
    mean = xg.mean(-1, keepdims=True)
    var = ((xg - mean) ** 2).mean(-1, keepdims=True)
    xn = ((xg - mean) / jnp.sqrt(var + eps)).reshape(N, C, H, W)
    return xn * gamma[None, :, None, None] + beta[None, :, None, None]


def _elu(x):
    return jnp.where(x > 0, x, jnp.exp(x) - 1.0)


def residual_conv_reference(x_nchw, raw, stride):
    y = _elu(_ref_gn(_ref_conv(x_nchw, raw["w1"], raw["b1"], stride, 1),
                     raw["g1"], raw["bt1"]))
    y = _elu(_ref_gn(_ref_conv(y, raw["w2"], raw["b2"], 1, 1),
                     raw["g2"], raw["bt2"]))
    s = _ref_conv(x_nchw, raw["w3"], raw["b3"], stride, 0)
    return _elu(_ref_gn(y + s, raw["g3"], raw["bt3"]))


# ---------------------------------- main ------------------------------------ #
if __name__ == "__main__":
    in_channels, out_channels, stride = 16, 32, 2
    N, H, W = 2, 16, 16

    key = jax.random.PRNGKey(0)
    ks = jax.random.split(key, 16)

    raw = {
        "w1": 0.1 * jax.random.normal(ks[0], (out_channels, in_channels, 3, 3), jnp.float32),
        "b1": 0.1 * jax.random.normal(ks[1], (out_channels,), jnp.float32),
        "g1": 1.0 + 0.1 * jax.random.normal(ks[2], (out_channels,), jnp.float32),
        "bt1": 0.1 * jax.random.normal(ks[3], (out_channels,), jnp.float32),
        "w2": 0.1 * jax.random.normal(ks[4], (out_channels, out_channels, 3, 3), jnp.float32),
        "b2": 0.1 * jax.random.normal(ks[5], (out_channels,), jnp.float32),
        "g2": 1.0 + 0.1 * jax.random.normal(ks[6], (out_channels,), jnp.float32),
        "bt2": 0.1 * jax.random.normal(ks[7], (out_channels,), jnp.float32),
        "w3": 0.1 * jax.random.normal(ks[8], (out_channels, in_channels, 1, 1), jnp.float32),
        "b3": 0.1 * jax.random.normal(ks[9], (out_channels,), jnp.float32),
        "g3": 1.0 + 0.1 * jax.random.normal(ks[10], (out_channels,), jnp.float32),
        "bt3": 0.1 * jax.random.normal(ks[11], (out_channels,), jnp.float32),
    }

    params = {
        "w1": conv3x3_w_to_matrix(raw["w1"]),
        "w2": conv3x3_w_to_matrix(raw["w2"]),
        "w3": raw["w3"].reshape(out_channels, in_channels).T,
        "vecs": jnp.stack([raw["b1"], raw["g1"], raw["bt1"],
                           raw["b2"], raw["g2"], raw["bt2"],
                           raw["b3"], raw["g3"], raw["bt3"]], axis=0),
    }

    x = jax.random.normal(ks[12], (N, in_channels, H, W), jnp.float32)
    ref = jax.block_until_ready(residual_conv_reference(x, raw, stride))

    # samples_per_block=1 : grid=(N,) "parallel" (v7x megacore friendly)
    # samples_per_block=N : batch folded into the matmul M dim (v5e/v6e friendly)
    for spb in (1, N):
        fwd = jax.jit(functools.partial(residual_conv_forward, stride=stride,
                                        samples_per_block=spb))
        out = jax.block_until_ready(fwd(x, params))
        assert out.shape == ref.shape, (spb, out.shape, ref.shape)
        err = float(jnp.max(jnp.abs(out - ref)))
        assert jnp.allclose(out, ref, atol=1e-4, rtol=1e-4), (spb, err)

    print("KERNEL_OK")
</pallas_src>

<mosaic_0001>
module attributes {stable_mosaic.version = 11 : i64} {
  func.func @fused_residual_conv_kernel(%arg0: i32, %arg1: memref<1x36x9x16xf32, #tpu.memory_space<vmem>>, %arg2: memref<144x32xf32, #tpu.memory_space<vmem>>, %arg3: memref<288x32xf32, #tpu.memory_space<vmem>>, %arg4: memref<16x32xf32, #tpu.memory_space<vmem>>, %arg5: memref<32x32xf32, #tpu.memory_space<vmem>>, %arg6: memref<9x32xf32, #tpu.memory_space<vmem>>, %arg7: memref<1x32x64xf32, #tpu.memory_space<vmem>>, %arg8: memref<64x144xf32, #tpu.memory_space<vmem>>, %arg9: memref<64x288xf32, #tpu.memory_space<vmem>>, %arg10: memref<1x10x10x32xf32, #tpu.memory_space<vmem>>) attributes {dimension_semantics = [#tpu.dimension_semantics<parallel>], iteration_bounds = array<i64: 2>, scalar_prefetch = 0 : i64, scratch_operands = 3 : i64, tpu.core_type = #tpu.core_type<tc>, window_params = [{transform_indices = @transform_0, window_bounds = array<i64: 1, 36, 9, 16>}, {pipeline_mode = #tpu.pipeline_mode<synchronous>, transform_indices = @transform_1, window_bounds = array<i64: 144, 32>}, {pipeline_mode = #tpu.pipeline_mode<synchronous>, transform_indices = @transform_2, window_bounds = array<i64: 288, 32>}, {pipeline_mode = #tpu.pipeline_mode<synchronous>, transform_indices = @transform_3, window_bounds = array<i64: 16, 32>}, {pipeline_mode = #tpu.pipeline_mode<synchronous>, transform_indices = @transform_4, window_bounds = array<i64: 32, 32>}, {pipeline_mode = #tpu.pipeline_mode<synchronous>, transform_indices = @transform_5, window_bounds = array<i64: 9, 32>}, {transform_indices = @transform_6, window_bounds = array<i64: 1, 32, 64>}]} {
    %c0 = arith.constant 0 : index
    %c0_0 = arith.constant 0 : index
    %0 = vector.load %arg5[%c0, %c0_0] : memref<32x32xf32, #tpu.memory_space<vmem>>, vector<32x32xf32>
    %c0_1 = arith.constant 0 : index
    %c0_2 = arith.constant 0 : index
    %c0_3 = arith.constant 0 : index
    %c0_4 = arith.constant 0 : index
    %1 = vector.load %arg1[%c0_1, %c0_2, %c0_3, %c0_4] : memref<1x36x9x16xf32, #tpu.memory_space<vmem>>, vector<1x8x8x16xf32>
    %2 = vector.shape_cast %1 : vector<1x8x8x16xf32> to vector<64x16xf32>
    %c0_5 = arith.constant 0 : index
    %c0_6 = arith.constant 0 : index
    %3 = vector.load %arg8[%c0_5, %c0_6] : memref<64x144xf32, #tpu.memory_space<vmem>>, vector<64x16xf32>
    tpu.vector_store %arg8[%c0_5, %c0_6], %2 {strides = array<i32>} : memref<64x144xf32, #tpu.memory_space<vmem>>, vector<64x16xf32>,
    %c0_7 = arith.constant 0 : index
    %c9 = arith.constant 9 : index
    %c0_8 = arith.constant 0 : index
    %c0_9 = arith.constant 0 : index
    %4 = vector.load %arg1[%c0_7, %c9, %c0_8, %c0_9] : memref<1x36x9x16xf32, #tpu.memory_space<vmem>>, vector<1x8x8x16xf32>
    %5 = vector.shape_cast %4 : vector<1x8x8x16xf32> to vector<64x16xf32>
    %c0_10 = arith.constant 0 : index
    %c16 = arith.constant 16 : index
    %6 = vector.load %arg8[%c0_10, %c16] : memref<64x144xf32, #tpu.memory_space<vmem>>, vector<64x16xf32>
    tpu.vector_store %arg8[%c0_10, %c16], %5 {strides = array<i32>} : memref<64x144xf32, #tpu.memory_space<vmem>>, vector<64x16xf32>,
    %c0_11 = arith.constant 0 : index
    %c0_12 = arith.constant 0 : index
    %c1 = arith.constant 1 : index
    %c0_13 = arith.constant 0 : index
    %7 = vector.load %arg1[%c0_11, %c0_12, %c1, %c0_13] : memref<1x36x9x16xf32, #tpu.memory_space<vmem>>, vector<1x8x8x16xf32>
    %8 = vector.shape_cast %7 : vector<1x8x8x16xf32> to vector<64x16xf32>
    %c0_14 = arith.constant 0 : index
    %c32 = arith.constant 32 : index
    %9 = vector.load %arg8[%c0_14, %c32] : memref<64x144xf32, #tpu.memory_space<vmem>>, vector<64x16xf32>
    tpu.vector_store %arg8[%c0_14, %c32], %8 {strides = array<i32>} : memref<64x144xf32, #tpu.memory_space<vmem>>, vector<64x16xf32>,
    %c0_15 = arith.constant 0 : index
    %c18 = arith.constant 18 : index
    %c0_16 = arith.constant 0 : index
    %c0_17 = arith.constant 0 : index
    %10 = vector.load %arg1[%c0_15, %c18, %c0_16, %c0_17] : memref<1x36x9x16xf32, #tpu.memory_space<vmem>>, vector<1x8x8x16xf32>
    %11 = vector.shape_cast %10 : vector<1x8x8x16xf32> to vector<64x16xf32>
    %c0_18 = arith.constant 0 : index
    %c48 = arith.constant 48 : index
    %12 = vector.load %arg8[%c0_18, %c48] : memref<64x144xf32, #tpu.memory_space<vmem>>, vector<64x16xf32>
    tpu.vector_store %arg8[%c0_18, %c48], %11 {strides = array<i32>} : memref<64x144xf32, #tpu.memory_space<vmem>>, vector<64x16xf32>,
    %c0_19 = arith.constant 0 : index
    %c27 = arith.constant 27 : index
    %c0_20 = arith.constant 0 : index
    %c0_21 = arith.constant 0 : index
    %13 = vector.load %arg1[%c0_19, %c27, %c0_20, %c0_21] : memref<1x36x9x16xf32, #tpu.memory_space<vmem>>, vector<1x8x8x16xf32>
    %14 = vector.shape_cast %13 : vector<1x8x8x16xf32> to vector<64x16xf32>
    %c0_22 = arith.constant 0 : index
    %c64 = arith.constant 64 : index
    %15 = vector.load %arg8[%c0_22, %c64] : memref<64x144xf32, #tpu.memory_space<vmem>>, vector<64x16xf32>
    tpu.vector_store %arg8[%c0_22, %c64], %14 {strides = array<i32>} : memref<64x144xf32, #tpu.memory_space<vmem>>, vector<64x16xf32>,
    %c0_23 = arith.constant 0 : index
    %c18_24 = arith.constant 18 : index
    %c1_25 = arith.constant 1 : index
    %c0_26 = arith.constant 0 : index
    %16 = vector.load %arg1[%c0_23, %c18_24, %c1_25, %c0_26] : memref<1x36x9x16xf32, #tpu.memory_space<vmem>>, vector<1x8x8x16xf32>
    %17 = vector.shape_cast %16 : vector<1x8x8x16xf32> to vector<64x16xf32>
    %c0_27 = arith.constant 0 : index
    %c80 = arith.constant 80 : index
    %18 = vector.load %arg8[%c0_27, %c80] : memref<64x144xf32, #tpu.memory_space<vmem>>, vector<64x16xf32>
    tpu.vector_store %arg8[%c0_27, %c80], %17 {strides = array<i32>} : memref<64x144xf32, #tpu.memory_space<vmem>>, vector<64x16xf32>,
    %c0_28 = arith.constant 0 : index
    %c1_29 = arith.constant 1 : index
    %c0_30 = arith.constant 0 : index
    %c0_31 = arith.constant 0 : index
    %19 = vector.load %arg1[%c0_28, %c1_29, %c0_30, %c0_31] : memref<1x36x9x16xf32, #tpu.memory_space<vmem>>, vector<1x8x8x16xf32>
    %20 = vector.shape_cast %19 : vector<1x8x8x16xf32> to vector<64x16xf32>
    %c0_32 = arith.constant 0 : index
    %c96 = arith.constant 96 : index
    %21 = vector.load %arg8[%c0_32, %c96] : memref<64x144xf32, #tpu.memory_space<vmem>>, vector<64x16xf32>
    tpu.vector_store %arg8[%c0_32, %c96], %20 {strides = array<i32>} : memref<64x144xf32, #tpu.memory_space<vmem>>, vector<64x16xf32>,
    %c0_33 = arith.constant 0 : index
    %c10 = arith.constant 10 : index
    %c0_34 = arith.constant 0 : index
    %c0_35 = arith.constant 0 : index
    %22 = vector.load %arg1[%c0_33, %c10, %c0_34, %c0_35] : memref<1x36x9x16xf32, #tpu.memory_space<vmem>>, vector<1x8x8x16xf32>
    %23 = vector.shape_cast %22 : vector<1x8x8x16xf32> to vector<64x16xf32>
    %c0_36 = arith.constant 0 : index
    %c112 = arith.constant 112 : index
    %24 = vector.load %arg8[%c0_36, %c112] : memref<64x144xf32, #tpu.memory_space<vmem>>, vector<64x16xf32>
    tpu.vector_store %arg8[%c0_36, %c112], %23 {strides = array<i32>} : memref<64x144xf32, #tpu.memory_space<vmem>>, vector<64x16xf32>,
    %c0_37 = arith.constant 0 : index
    %c1_38 = arith.constant 1 : index
    %c1_39 = arith.constant 1 : index
    %c0_40 = arith.constant 0 : index
    %25 = vector.load %arg1[%c0_37, %c1_38, %c1_39, %c0_40] : memref<1x36x9x16xf32, #tpu.memory_space<vmem>>, vector<1x8x8x16xf32>
    %26 = vector.shape_cast %25 : vector<1x8x8x16xf32> to vector<64x16xf32>
    %c0_41 = arith.constant 0 : index
    %c128 = arith.constant 128 : index
    %27 = vector.load %arg8[%c0_41, %c128] : memref<64x144xf32, #tpu.memory_space<vmem>>, vector<64x16xf32>
    tpu.vector_store %arg8[%c0_41, %c128], %26 {strides = array<i32>} : memref<64x144xf32, #tpu.memory_space<vmem>>, vector<64x16xf32>,
    %c0_42 = arith.constant 0 : index
    %c0_43 = arith.constant 0 : index
    %28 = vector.load %arg8[%c0_42, %c0_43] : memref<64x144xf32, #tpu.memory_space<vmem>>, vector<64x144xf32>
    %c0_44 = arith.constant 0 : index
    %c0_45 = arith.constant 0 : index
    %29 = vector.load %arg2[%c0_44, %c0_45] : memref<144x32xf32, #tpu.memory_space<vmem>>, vector<144x32xf32>
    %cst = arith.constant dense<0.000000e+00> : vector<64x32xf32>
    %30 = tpu.matmul %28, %29, %cst {dimension_numbers = #tpu.dot_dimension_numbers<[1], [0], [0], [1], [0, 0, 1, 1], [], []>} : vector<64x144xf32>, vector<144x32xf32>, vector<64x32xf32> -> vector<64x32xf32>
    %c0_46 = arith.constant 0 : index
    %c0_47 = arith.constant 0 : index
    %31 = vector.load %arg6[%c0_46, %c0_47] : memref<9x32xf32, #tpu.memory_space<vmem>>, vector<1x32xf32>
    %32 = vector.broadcast %31 : vector<1x32xf32> to vector<64x32xf32>
    %33 = arith.addf %30, %32 : vector<64x32xf32>
    %c1_48 = arith.constant 1 : index
    %c0_49 = arith.constant 0 : index
    %34 = vector.load %arg6[%c1_48, %c0_49] : memref<9x32xf32, #tpu.memory_space<vmem>>, vector<1x32xf32>
    %c2 = arith.constant 2 : index
    %c0_50 = arith.constant 0 : index
    %35 = vector.load %arg6[%c2, %c0_50] : memref<9x32xf32, #tpu.memory_space<vmem>>, vector<1x32xf32>
    %36 = vector.shape_cast %33 : vector<64x32xf32> to vector<1x64x32xf32>
    %cst_51 = arith.constant dense<0.000000e+00> : vector<1x32xf32>
    %37 = vector.multi_reduction <add>, %36, %cst_51 [1] : vector<1x64x32xf32> to vector<1x32xf32>
    %38 = arith.mulf %36, %36 : vector<1x64x32xf32>
    %cst_52 = arith.constant dense<0.000000e+00> : vector<1x32xf32>
    %39 = vector.multi_reduction <add>, %38, %cst_52 [1] : vector<1x64x32xf32> to vector<1x32xf32>
    %40 = tpu.concatenate %37, %39 in 0 : vector<1x32xf32>, vector<1x32xf32> -> vector<2x32xf32>
    %cst_53 = arith.constant dense<0.000000e+00> : vector<2x32xf32>
    %41 = tpu.matmul %40, %0, %cst_53 {dimension_numbers = #tpu.dot_dimension_numbers<[1], [0], [0], [1], [0, 0, 1, 1], [], []>} : vector<2x32xf32>, vector<32x32xf32>, vector<2x32xf32> -> vector<2x32xf32>
    %42 = vector.extract_strided_slice %41 {offsets = [0, 0], sizes = [1, 32], strides = [1, 1]} : vector<2x32xf32> to vector<1x32xf32>
    %43 = vector.extract_strided_slice %41 {offsets = [1, 0], sizes = [1, 32], strides = [1, 1]} : vector<2x32xf32> to vector<1x32xf32>
    %44 = arith.mulf %42, %42 : vector<1x32xf32>
    %45 = arith.subf %43, %44 : vector<1x32xf32>
    %cst_54 = arith.constant 9.99999974E-6 : f32
    %46 = vector.broadcast %cst_54 : f32 to vector<1x32xf32>
    %47 = arith.addf %45, %46 : vector<1x32xf32>
    %48 = math.rsqrt %47 : vector<1x32xf32>
    %49 = arith.mulf %34, %48 : vector<1x32xf32>
    %50 = arith.mulf %42, %49 : vector<1x32xf32>
    %51 = arith.subf %35, %50 : vector<1x32xf32>
    %52 = vector.shape_cast %49 : vector<1x32xf32> to vector<1x1x32xf32>
    %53 = vector.broadcast %52 : vector<1x1x32xf32> to vector<1x64x32xf32>
    %54 = arith.mulf %36, %53 : vector<1x64x32xf32>
    %55 = vector.shape_cast %51 : vector<1x32xf32> to vector<1x1x32xf32>
    %56 = vector.broadcast %55 : vector<1x1x32xf32> to vector<1x64x32xf32>
    %57 = arith.addf %54, %56 : vector<1x64x32xf32>
    %58 = vector.shape_cast %57 : vector<1x64x32xf32> to vector<64x32xf32>
    %cst_55 = arith.constant 0.000000e+00 : f32
    %59 = vector.broadcast %cst_55 : f32 to vector<64x32xf32>
    %60 = arith.cmpf ogt, %58, %59 : vector<64x32xf32>
    %cst_56 = arith.constant 0.000000e+00 : f32
    %61 = vector.broadcast %cst_56 : f32 to vector<64x32xf32>
    %62 = arith.minimumf %58, %61 : vector<64x32xf32>
    %63 = math.exp %62 : vector<64x32xf32>
    %cst_57 = arith.constant 1.000000e+00 : f32
    %64 = vector.broadcast %cst_57 : f32 to vector<64x32xf32>
    %65 = arith.subf %63, %64 : vector<64x32xf32>
    %66 = arith.select %60, %58, %65 : vector<64x32xi1>, vector<64x32xf32>
    %cst_58 = arith.constant 0.000000e+00 : f32
    %67 = vector.broadcast %cst_58 : f32 to vector<1x1x10x32xf32>
    %c0_59 = arith.constant 0 : index
    %c0_60 = arith.constant 0 : index
    %c0_61 = arith.constant 0 : index
    %c0_62 = arith.constant 0 : index
    %68 = vector.load %arg10[%c0_59, %c0_60, %c0_61, %c0_62] : memref<1x10x10x32xf32, #tpu.memory_space<vmem>>, vector<1x1x10x32xf32>
    tpu.vector_store %arg10[%c0_59, %c0_60, %c0_61, %c0_62], %67 {strides = array<i32>} : memref<1x10x10x32xf32, #tpu.memory_space<vmem>>, vector<1x1x10x32xf32>,
    %cst_63 = arith.constant 0.000000e+00 : f32
    %69 = vector.broadcast %cst_63 : f32 to vector<1x1x10x32xf32>
    %c0_64 = arith.constant 0 : index
    %c9_65 = arith.constant 9 : index
    %c0_66 = arith.constant 0 : index
    %c0_67 = arith.constant 0 : index
    %70 = vector.load %arg10[%c0_64, %c9_65, %c0_66, %c0_67] : memref<1x10x10x32xf32, #tpu.memory_space<vmem>>, vector<1x1x10x32xf32>
    tpu.vector_store %arg10[%c0_64, %c9_65, %c0_66, %c0_67], %69 {strides = array<i32>} : memref<1x10x10x32xf32, #tpu.memory_space<vmem>>, vector<1x1x10x32xf32>,
    %cst_68 = arith.constant 0.000000e+00 : f32
    %71 = vector.broadcast %cst_68 : f32 to vector<1x10x1x32xf32>
    %c0_69 = arith.constant 0 : index
    %c0_70 = arith.constant 0 : index
    %c0_71 = arith.constant 0 : index
    %c0_72 = arith.constant 0 : index
    %72 = vector.load %arg10[%c0_69, %c0_70, %c0_71, %c0_72] : memref<1x10x10x32xf32, #tpu.memory_space<vmem>>, vector<1x10x1x32xf32>
    tpu.vector_store %arg10[%c0_69, %c0_70, %c0_71, %c0_72], %71 {strides = array<i32>} : memref<1x10x10x32xf32, #tpu.memory_space<vmem>>, vector<1x10x1x32xf32>,
    %cst_73 = arith.constant 0.000000e+00 : f32
    %73 = vector.broadcast %cst_73 : f32 to vector<1x10x1x32xf32>
    %c0_74 = arith.constant 0 : index
    %c0_75 = arith.constant 0 : index
    %c9_76 = arith.constant 9 : index
    %c0_77 = arith.constant 0 : index
    %74 = vector.load %arg10[%c0_74, %c0_75, %c9_76, %c0_77] : memref<1x10x10x32xf32, #tpu.memory_space<vmem>>, vector<1x10x1x32xf32>
    tpu.vector_store %arg10[%c0_74, %c0_75, %c9_76, %c0_77], %73 {strides = array<i32>} : memref<1x10x10x32xf32, #tpu.memory_space<vmem>>, vector<1x10x1x32xf32>,
    %75 = vector.shape_cast %66 : vector<64x32xf32> to vector<1x8x8x32xf32>
    %c0_78 = arith.constant 0 : index
    %c1_79 = arith.constant 1 : index
    %c1_80 = arith.constant 1 : index
    %c0_81 = arith.constant 0 : index
    %76 = vector.load %arg10[%c0_78, %c1_79, %c1_80, %c0_81] : memref<1x10x10x32xf32, #tpu.memory_space<vmem>>, vector<1x8x8x32xf32>
    tpu.vector_store %arg10[%c0_78, %c1_79, %c1_80, %c0_81], %75 {strides = array<i32>} : memref<1x10x10x32xf32, #tpu.memory_space<vmem>>, vector<1x8x8x32xf32>,
    %c0_82 = arith.constant 0 : index
    %c0_83 = arith.constant 0 : index
    %c0_84 = arith.constant 0 : index
    %c0_85 = arith.constant 0 : index
    %77 = vector.load %arg10[%c0_82, %c0_83, %c0_84, %c0_85] : memref<1x10x10x32xf32, #tpu.memory_space<vmem>>, vector<1x8x8x32xf32>
    %78 = vector.shape_cast %77 : vector<1x8x8x32xf32> to vector<64x32xf32>
    %c0_86 = arith.constant 0 : index
    %c0_87 = arith.constant 0 : index
    %79 = vector.load %arg9[%c0_86, %c0_87] : memref<64x288xf32, #tpu.memory_space<vmem>>, vector<64x32xf32>
    tpu.vector_store %arg9[%c0_86, %c0_87], %78 {strides = array<i32>} : memref<64x288xf32, #tpu.memory_space<vmem>>, vector<64x32xf32>,
    %c0_88 = arith.constant 0 : index
    %c0_89 = arith.constant 0 : index
    %c1_90 = arith.constant 1 : index
    %c0_91 = arith.constant 0 : index
    %80 = vector.load %arg10[%c0_88, %c0_89, %c1_90, %c0_91] : memref<1x10x10x32xf32, #tpu.memory_space<vmem>>, vector<1x8x8x32xf32>
    %81 = vector.shape_cast %80 : vector<1x8x8x32xf32> to vector<64x32xf32>
    %c0_92 = arith.constant 0 : index
    %c32_93 = arith.constant 32 : index
    %82 = vector.load %arg9[%c0_92, %c32_93] : memref<64x288xf32, #tpu.memory_space<vmem>>, vector<64x32xf32>
    tpu.vector_store %arg9[%c0_92, %c32_93], %81 {strides = array<i32>} : memref<64x288xf32, #tpu.memory_space<vmem>>, vector<64x32xf32>,
    %c0_94 = arith.constant 0 : index
    %c0_95 = arith.constant 0 : index
    %c2_96 = arith.constant 2 : index
    %c0_97 = arith.constant 0 : index
    %83 = vector.load %arg10[%c0_94, %c0_95, %c2_96, %c0_97] : memref<1x10x10x32xf32, #tpu.memory_space<vmem>>, vector<1x8x8x32xf32>
    %84 = vector.shape_cast %83 : vector<1x8x8x32xf32> to vector<64x32xf32>
    %c0_98 = arith.constant 0 : index
    %c64_99 = arith.constant 64 : index
    %85 = vector.load %arg9[%c0_98, %c64_99] : memref<64x288xf32, #tpu.memory_space<vmem>>, vector<64x32xf32>
    tpu.vector_store %arg9[%c0_98, %c64_99], %84 {strides = array<i32>} : memref<64x288xf32, #tpu.memory_space<vmem>>, vector<64x32xf32>,
    %c0_100 = arith.constant 0 : index
    %c1_101 = arith.constant 1 : index
    %c0_102 = arith.constant 0 : index
    %c0_103 = arith.constant 0 : index
    %86 = vector.load %arg10[%c0_100, %c1_101, %c0_102, %c0_103] : memref<1x10x10x32xf32, #tpu.memory_space<vmem>>, vector<1x8x8x32xf32>
    %87 = vector.shape_cast %86 : vector<1x8x8x32xf32> to vector<64x32xf32>
    %c0_104 = arith.constant 0 : index
    %c96_105 = arith.constant 96 : index
    %88 = vector.load %arg9[%c0_104, %c96_105] : memref<64x288xf32, #tpu.memory_space<vmem>>, vector<64x32xf32>
    tpu.vector_store %arg9[%c0_104, %c96_105], %87 {strides = array<i32>} : memref<64x288xf32, #tpu.memory_space<vmem>>, vector<64x32xf32>,
    %c0_106 = arith.constant 0 : index
    %c1_107 = arith.constant 1 : index
    %c1_108 = arith.constant 1 : index
    %c0_109 = arith.constant 0 : index
    %89 = vector.load %arg10[%c0_106, %c1_107, %c1_108, %c0_109] : memref<1x10x10x32xf32, #tpu.memory_space<vmem>>, vector<1x8x8x32xf32>
    %90 = vector.shape_cast %89 : vector<1x8x8x32xf32> to vector<64x32xf32>
    %c0_110 = arith.constant 0 : index
    %c128_111 = arith.constant 128 : index
    %91 = vector.load %arg9[%c0_110, %c128_111] : memref<64x288xf32, #tpu.memory_space<vmem>>, vector<64x32xf32>
    tpu.vector_store %arg9[%c0_110, %c128_111], %90 {strides = array<i32>} : memref<64x288xf32, #tpu.memory_space<vmem>>, vector<64x32xf32>,
    %c0_112 = arith.constant 0 : index
    %c1_113 = arith.constant 1 : index
    %c2_114 = arith.constant 2 : index
    %c0_115 = arith.constant 0 : index
    %92 = vector.load %arg10[%c0_112, %c1_113, %c2_114, %c0_115] : memref<1x10x10x32xf32, #tpu.memory_space<vmem>>, vector<1x8x8x32xf32>
    %93 = vector.shape_cast %92 : vector<1x8x8x32xf32> to vector<64x32xf32>
    %c0_116 = arith.constant 0 : index
    %c160 = arith.constant 160 : index
    %94 = vector.load %arg9[%c0_116, %c160] : memref<64x288xf32, #tpu.memory_space<vmem>>, vector<64x32xf32>
    tpu.vector_store %arg9[%c0_116, %c160], %93 {strides = array<i32>} : memref<64x288xf32, #tpu.memory_space<vmem>>, vector<64x32xf32>,
    %c0_117 = arith.constant 0 : index
    %c2_118 = arith.constant 2 : index
    %c0_119 = arith.constant 0 : index
    %c0_120 = arith.constant 0 : index
    %95 = vector.load %arg10[%c0_117, %c2_118, %c0_119, %c0_120] : memref<1x10x10x32xf32, #tpu.memory_space<vmem>>, vector<1x8x8x32xf32>
    %96 = vector.shape_cast %95 : vector<1x8x8x32xf32> to vector<64x32xf32>
    %c0_121 = arith.constant 0 : index
    %c192 = arith.constant 192 : index
    %97 = vector.load %arg9[%c0_121, %c192] : memref<64x288xf32, #tpu.memory_space<vmem>>, vector<64x32xf32>
    tpu.vector_store %arg9[%c0_121, %c192], %96 {strides = array<i32>} : memref<64x288xf32, #tpu.memory_space<vmem>>, vector<64x32xf32>,
    %c0_122 = arith.constant 0 : index
    %c2_123 = arith.constant 2 : index
    %c1_124 = arith.constant 1 : index
    %c0_125 = arith.constant 0 : index
    %98 = vector.load %arg10[%c0_122, %c2_123, %c1_124, %c0_125] : memref<1x10x10x32xf32, #tpu.memory_space<vmem>>, vector<1x8x8x32xf32>
    %99 = vector.shape_cast %98 : vector<1x8x8x32xf32> to vector<64x32xf32>
    %c0_126 = arith.constant 0 : index
    %c224 = arith.constant 224 : index
    %100 = vector.load %arg9[%c0_126, %c224] : memref<64x288xf32, #tpu.memory_space<vmem>>, vector<64x32xf32>
    tpu.vector_store %arg9[%c0_126, %c224], %99 {strides = array<i32>} : memref<64x288xf32, #tpu.memory_space<vmem>>, vector<64x32xf32>,
    %c0_127 = arith.constant 0 : index
    %c2_128 = arith.constant 2 : index
    %c2_129 = arith.constant 2 : index
    %c0_130 = arith.constant 0 : index
    %101 = vector.load %arg10[%c0_127, %c2_128, %c2_129, %c0_130] : memref<1x10x10x32xf32, #tpu.memory_space<vmem>>, vector<1x8x8x32xf32>
    %102 = vector.shape_cast %101 : vector<1x8x8x32xf32> to vector<64x32xf32>
    %c0_131 = arith.constant 0 : index
    %c256 = arith.constant 256 : index
    %103 = vector.load %arg9[%c0_131, %c256] : memref<64x288xf32, #tpu.memory_space<vmem>>, vector<64x32xf32>
    tpu.vector_store %arg9[%c0_131, %c256], %102 {strides = array<i32>} : memref<64x288xf32, #tpu.memory_space<vmem>>, vector<64x32xf32>,
    %c0_132 = arith.constant 0 : index
    %c0_133 = arith.constant 0 : index
    %104 = vector.load %arg9[%c0_132, %c0_133] : memref<64x288xf32, #tpu.memory_space<vmem>>, vector<64x288xf32>
    %c0_134 = arith.constant 0 : index
    %c0_135 = arith.constant 0 : index
    %105 = vector.load %arg3[%c0_134, %c0_135] : memref<288x32xf32, #tpu.memory_space<vmem>>, vector<288x32xf32>
    %cst_136 = arith.constant dense<0.000000e+00> : vector<64x32xf32>
    %106 = tpu.matmul %104, %105, %cst_136 {dimension_numbers = #tpu.dot_dimension_numbers<[1], [0], [0], [1], [0, 0, 1, 1], [], []>} : vector<64x288xf32>, vector<288x32xf32>, vector<64x32xf32> -> vector<64x32xf32>
    %c3 = arith.constant 3 : index
    %c0_137 = arith.constant 0 : index
    %107 = vector.load %arg6[%c3, %c0_137] : memref<9x32xf32, #tpu.memory_space<vmem>>, vector<1x32xf32>
    %108 = vector.broadcast %107 : vector<1x32xf32> to vector<64x32xf32>
    %109 = arith.addf %106, %108 : vector<64x32xf32>
    %c4 = arith.constant 4 : index
    %c0_138 = arith.constant 0 : index
    %110 = vector.load %arg6[%c4, %c0_138] : memref<9x32xf32, #tpu.memory_space<vmem>>, vector<1x32xf32>
    %c5 = arith.constant 5 : index
    %c0_139 = arith.constant 0 : index
    %111 = vector.load %arg6[%c5, %c0_139] : memref<9x32xf32, #tpu.memory_space<vmem>>, vector<1x32xf32>
    %112 = vector.shape_cast %109 : vector<64x32xf32> to vector<1x64x32xf32>
    %cst_140 = arith.constant dense<0.000000e+00> : vector<1x32xf32>
    %113 = vector.multi_reduction <add>, %112, %cst_140 [1] : vector<1x64x32xf32> to vector<1x32xf32>
    %114 = arith.mulf %112, %112 : vector<1x64x32xf32>
    %cst_141 = arith.constant dense<0.000000e+00> : vector<1x32xf32>
    %115 = vector.multi_reduction <add>, %114, %cst_141 [1] : vector<1x64x32xf32> to vector<1x32xf32>
    %116 = tpu.concatenate %113, %115 in 0 : vector<1x32xf32>, vector<1x32xf32> -> vector<2x32xf32>
    %cst_142 = arith.constant dense<0.000000e+00> : vector<2x32xf32>
    %117 = tpu.matmul %116, %0, %cst_142 {dimension_numbers = #tpu.dot_dimension_numbers<[1], [0], [0], [1], [0, 0, 1, 1], [], []>} : vector<2x32xf32>, vector<32x32xf32>, vector<2x32xf32> -> vector<2x32xf32>
    %118 = vector.extract_strided_slice %117 {offsets = [0, 0], sizes = [1, 32], strides = [1, 1]} : vector<2x32xf32> to vector<1x32xf32>
    %119 = vector.extract_strided_slice %117 {offsets = [1, 0], sizes = [1, 32], strides = [1, 1]} : vector<2x32xf32> to vector<1x32xf32>
    %120 = arith.mulf %118, %118 : vector<1x32xf32>
    %121 = arith.subf %119, %120 : vector<1x32xf32>
    %cst_143 = arith.constant 9.99999974E-6 : f32
    %122 = vector.broadcast %cst_143 : f32 to vector<1x32xf32>
    %123 = arith.addf %121, %122 : vector<1x32xf32>
    %124 = math.rsqrt %123 : vector<1x32xf32>
    %125 = arith.mulf %110, %124 : vector<1x32xf32>
    %126 = arith.mulf %118, %125 : vector<1x32xf32>
    %127 = arith.subf %111, %126 : vector<1x32xf32>
    %128 = vector.shape_cast %125 : vector<1x32xf32> to vector<1x1x32xf32>
    %129 = vector.broadcast %128 : vector<1x1x32xf32> to vector<1x64x32xf32>
    %130 = arith.mulf %112, %129 : vector<1x64x32xf32>
    %131 = vector.shape_cast %127 : vector<1x32xf32> to vector<1x1x32xf32>
    %132 = vector.broadcast %131 : vector<1x1x32xf32> to vector<1x64x32xf32>
    %133 = arith.addf %130, %132 : vector<1x64x32xf32>
    %134 = vector.shape_cast %133 : vector<1x64x32xf32> to vector<64x32xf32>
    %cst_144 = arith.constant 0.000000e+00 : f32
    %135 = vector.broadcast %cst_144 : f32 to vector<64x32xf32>
    %136 = arith.cmpf ogt, %134, %135 : vector<64x32xf32>
    %cst_145 = arith.constant 0.000000e+00 : f32
    %137 = vector.broadcast %cst_145 : f32 to vector<64x32xf32>
    %138 = arith.minimumf %134, %137 : vector<64x32xf32>
    %139 = math.exp %138 : vector<64x32xf32>
    %cst_146 = arith.constant 1.000000e+00 : f32
    %140 = vector.broadcast %cst_146 : f32 to vector<64x32xf32>
    %141 = arith.subf %139, %140 : vector<64x32xf32>
    %142 = arith.select %136, %134, %141 : vector<64x32xi1>, vector<64x32xf32>
    %c0_147 = arith.constant 0 : index
    %c0_148 = arith.constant 0 : index
    %143 = vector.load %arg4[%c0_147, %c0_148] : memref<16x32xf32, #tpu.memory_space<vmem>>, vector<16x32xf32>
    %cst_149 = arith.constant dense<0.000000e+00> : vector<64x32xf32>
    %144 = tpu.matmul %14, %143, %cst_149 {dimension_numbers = #tpu.dot_dimension_numbers<[1], [0], [0], [1], [0, 0, 1, 1], [], []>} : vector<64x16xf32>, vector<16x32xf32>, vector<64x32xf32> -> vector<64x32xf32>
    %c6 = arith.constant 6 : index
    %c0_150 = arith.constant 0 : index
    %145 = vector.load %arg6[%c6, %c0_150] : memref<9x32xf32, #tpu.memory_space<vmem>>, vector<1x32xf32>
    %146 = vector.broadcast %145 : vector<1x32xf32> to vector<64x32xf32>
    %147 = arith.addf %144, %146 : vector<64x32xf32>
    %148 = arith.addf %142, %147 : vector<64x32xf32>
    %c7 = arith.constant 7 : index
    %c0_151 = arith.constant 0 : index
    %149 = vector.load %arg6[%c7, %c0_151] : memref<9x32xf32, #tpu.memory_space<vmem>>, vector<1x32xf32>
    %c8 = arith.constant 8 : index
    %c0_152 = arith.constant 0 : index
    %150 = vector.load %arg6[%c8, %c0_152] : memref<9x32xf32, #tpu.memory_space<vmem>>, vector<1x32xf32>
    %151 = vector.shape_cast %148 : vector<64x32xf32> to vector<1x64x32xf32>
    %cst_153 = arith.constant dense<0.000000e+00> : vector<1x32xf32>
    %152 = vector.multi_reduction <add>, %151, %cst_153 [1] : vector<1x64x32xf32> to vector<1x32xf32>
    %153 = arith.mulf %151, %151 : vector<1x64x32xf32>
    %cst_154 = arith.constant dense<0.000000e+00> : vector<1x32xf32>
    %154 = vector.multi_reduction <add>, %153, %cst_154 [1] : vector<1x64x32xf32> to vector<1x32xf32>
    %155 = tpu.concatenate %152, %154 in 0 : vector<1x32xf32>, vector<1x32xf32> -> vector<2x32xf32>
    %cst_155 = arith.constant dense<0.000000e+00> : vector<2x32xf32>
    %156 = tpu.matmul %155, %0, %cst_155 {dimension_numbers = #tpu.dot_dimension_numbers<[1], [0], [0], [1], [0, 0, 1, 1], [], []>} : vector<2x32xf32>, vector<32x32xf32>, vector<2x32xf32> -> vector<2x32xf32>
    %157 = vector.extract_strided_slice %156 {offsets = [0, 0], sizes = [1, 32], strides = [1, 1]} : vector<2x32xf32> to vector<1x32xf32>
    %158 = vector.extract_strided_slice %156 {offsets = [1, 0], sizes = [1, 32], strides = [1, 1]} : vector<2x32xf32> to vector<1x32xf32>
    %159 = arith.mulf %157, %157 : vector<1x32xf32>
    %160 = arith.subf %158, %159 : vector<1x32xf32>
    %cst_156 = arith.constant 9.99999974E-6 : f32
    %161 = vector.broadcast %cst_156 : f32 to vector<1x32xf32>
    %162 = arith.addf %160, %161 : vector<1x32xf32>
    %163 = math.rsqrt %162 : vector<1x32xf32>
    %164 = arith.mulf %149, %163 : vector<1x32xf32>
    %165 = arith.mulf %157, %164 : vector<1x32xf32>
    %166 = arith.subf %150, %165 : vector<1x32xf32>
    %167 = vector.shape_cast %164 : vector<1x32xf32> to vector<1x1x32xf32>
    %168 = vector.broadcast %167 : vector<1x1x32xf32> to vector<1x64x32xf32>
    %169 = arith.mulf %151, %168 : vector<1x64x32xf32>
    %170 = vector.shape_cast %166 : vector<1x32xf32> to vector<1x1x32xf32>
    %171 = vector.broadcast %170 : vector<1x1x32xf32> to vector<1x64x32xf32>
    %172 = arith.addf %169, %171 : vector<1x64x32xf32>
    %173 = vector.shape_cast %172 : vector<1x64x32xf32> to vector<64x32xf32>
    %cst_157 = arith.constant 0.000000e+00 : f32
    %174 = vector.broadcast %cst_157 : f32 to vector<64x32xf32>
    %175 = arith.cmpf ogt, %173, %174 : vector<64x32xf32>
    %cst_158 = arith.constant 0.000000e+00 : f32
    %176 = vector.broadcast %cst_158 : f32 to vector<64x32xf32>
    %177 = arith.minimumf %173, %176 : vector<64x32xf32>
    %178 = math.exp %177 : vector<64x32xf32>
    %cst_159 = arith.constant 1.000000e+00 : f32
    %179 = vector.broadcast %cst_159 : f32 to vector<64x32xf32>
    %180 = arith.subf %178, %179 : vector<64x32xf32>
    %181 = arith.select %175, %173, %180 : vector<64x32xi1>, vector<64x32xf32>
    %182 = vector.shape_cast %181 : vector<64x32xf32> to vector<1x64x32xf32>
    %183 = vector.shape_cast %182 : vector<1x64x32xf32> to vector<64x32xf32>
    %184 = tpu.transpose %183, [1, 0] : vector<64x32xf32> -> vector<32x64xf32>
    %c0_160 = arith.constant 0 : index
    %c0_161 = arith.constant 0 : index
    %c0_162 = arith.constant 0 : index
    %185 = vector.load %arg7[%c0_160, %c0_161, %c0_162] : memref<1x32x64xf32, #tpu.memory_space<vmem>>, vector<1x32x64xf32>
    %186 = vector.shape_cast %185 : vector<1x32x64xf32> to vector<32x64xf32>
    %187 = vector.shape_cast %184 : vector<32x64xf32> to vector<1x32x64xf32>
    tpu.vector_store %arg7[%c0_160, %c0_161, %c0_162], %187 {strides = array<i32>} : memref<1x32x64xf32, #tpu.memory_space<vmem>>, vector<1x32x64xf32>,
    return
  }
  func.func @transform_0(%arg0: i32) -> (i32, i32, i32, i32) {
    %c0_i32 = arith.constant 0 : i32
    %c0_i32_0 = arith.constant 0 : i32
    %c0_i32_1 = arith.constant 0 : i32
    %c0_i32_2 = arith.constant 0 : i32
    return %arg0, %c0_i32, %c0_i32_0, %c0_i32_1 : i32, i32, i32, i32
  }
  func.func @transform_1(%arg0: i32) -> (i32, i32) {
    %c0_i32 = arith.constant 0 : i32
    %c0_i32_0 = arith.constant 0 : i32
    %c0_i32_1 = arith.constant 0 : i32
    return %c0_i32, %c0_i32_0 : i32, i32
  }
  func.func @transform_2(%arg0: i32) -> (i32, i32) {
    %c0_i32 = arith.constant 0 : i32
    %c0_i32_0 = arith.constant 0 : i32
    %c0_i32_1 = arith.constant 0 : i32
    return %c0_i32, %c0_i32_0 : i32, i32
  }
  func.func @transform_3(%arg0: i32) -> (i32, i32) {
    %c0_i32 = arith.constant 0 : i32
    %c0_i32_0 = arith.constant 0 : i32
    %c0_i32_1 = arith.constant 0 : i32
    return %c0_i32, %c0_i32_0 : i32, i32
  }
  func.func @transform_4(%arg0: i32) -> (i32, i32) {
    %c0_i32 = arith.constant 0 : i32
    %c0_i32_0 = arith.constant 0 : i32
    %c0_i32_1 = arith.constant 0 : i32
    return %c0_i32, %c0_i32_0 : i32, i32
  }
  func.func @transform_5(%arg0: i32) -> (i32, i32) {
    %c0_i32 = arith.constant 0 : i32
    %c0_i32_0 = arith.constant 0 : i32
    %c0_i32_1 = arith.constant 0 : i32
    return %c0_i32, %c0_i32_0 : i32, i32
  }
  func.func @transform_6(%arg0: i32) -> (i32, i32, i32) {
    %c0_i32 = arith.constant 0 : i32
    %c0_i32_0 = arith.constant 0 : i32
    %c0_i32_1 = arith.constant 0 : i32
    return %arg0, %c0_i32, %c0_i32_0 : i32, i32, i32
  }
}

</mosaic_0001>

<bundles_post_ra>
// kernel: residual_conv_forward.1
= control target key start
LH: loop header
LB: loop body
LE: loop exit
PB: predicated region body
PF: predicated region fallthrough
CT: control target
= control target key end

     0   :  { %s2758_s21 = smov 0   ;;  %s3840_s0 = inlined_call_operand.vmem [shape: f32[2,36,9,16], index: 0, kind: input, shape index: {}]   ;;  %s3841_s1 = inlined_call_operand.vmem [shape: f32[144,32], index: 1, kind: input, shape index: {}]   ;;  %s3842_s2 = inlined_call_operand.vmem [shape: f32[288,32], index: 2, kind: input, shape index: {}]   ;;  %s3843_s3 = inlined_call_operand.vmem [shape: f32[16,32], index: 3, kind: input, shape index: {}]   ;;  %s3844_s4 = inlined_call_operand.vmem [shape: f32[32,32], index: 4, kind: input, shape index: {}]   ;;  %s3845_s5 = inlined_call_operand.vmem [shape: f32[9,32], index: 5, kind: input, shape index: {}]   ;;  %s3846_s6 = inlined_call_operand.vmem [shape: f32[2,32,64], index: 6, kind: output, shape index: {}]  }
   0x1 LB: > { %s2343_s22 = sadd.s32 4294967295, %s2712_s21   ;;  %p2347_p0 = scmp.ge.s32.totalorder %s2712_s21, 1  ;;  %s2712_s21 = sphi %s2758_s21, %s16_s21  }
   0x2   : > { %p212_p1 = scmp.lt.s32.totalorder %s2712_s21, 3 }
   0x4   : > { %p213_p2 = pnand %p2347_p0, %p212_p1 }
   0x5   : > { %p242_p3 = scmp.lt.s32.totalorder (!%p213_p2), %s2343_s22, 1  ;;  %s2715_s11 = smov (!%p213_p2), 48  }
   0x6   : > { %216 = sbr.rel (%p213_p2) target bundleno = 1826 (0x722), region = 44  ;;  %s2716_s12 = smov (!%p213_p2), 16  }
   0x7   : > { %s2717_s17 = smov (!%p213_p2), 64   ;;  %s2718_s18 = smov (!%p213_p2), 32  }
   0x8   : > { %s2719_s23 = smov (!%p213_p2), 80   ;;  %s2720_s28 = smov (!%p213_p2), 96  }
   0x9   : > { %s2721_s7 = smov (!%p213_p2), 112  }
   0xb   : > { %v668_v0 = vld [vmem:[%s3841_s1 + $0x78] sm:$0xff]  ;;  %v2714_v1 = vmov 0.0   ;;  %v667_v2 = vld [vmem:[%s3841_s1 + $0x70] sm:$0xff]  ;;  %s3848_s22 = smov (!%p242_p3, %s2343_s22), 1  ;;  %v666_v3 = vld [vmem:[%s3841_s1 + $0x68] sm:$0xff]  ;;  %vm264_vm0 = vcmask 130048  }
   0xc   : > { %700 = vmatprep.subr.mxu0 %v2714_v1  ;;  %2557 = vmatprep.subr.mxu1 %v2714_v1  ;;  %s2626_s29 = smul.u32 576, %s3848_s22  ;;  %v665_v4 = vld [vmem:[%s3841_s1 + $0x60] sm:$0xff]  ;;  %v664_v8 = vld [vmem:[%s3841_s1 + $0x58] sm:$0xff]  ;;  %v663_v13 = vld [vmem:[%s3841_s1 + $0x50] sm:$0xff]  ;;  %vm314_vm1 = vcmask 261248   ;;  %vm363_vm2 = vcmask 392448  }
   0xd   : > { %701 = vmatpush1.msra.mxu0 %v668_v0  ;;  %v662_v19 = vld [vmem:[%s3841_s1 + $0x48] sm:$0xff]  ;;  %v661_v22 = vld [vmem:[%s3841_s1 + $0x40] sm:$0xff]  ;;  %v660_v26 = vld [vmem:[%s3841_s1 + $0x38] sm:$0xff]  ;;  %vm413_vm3 = vcmask 523648   ;;  %vm463_vm4 = vcmask 654848   ;;  %vm512_vm5 = vcmask 786048  }
   0xe   : > { %702 = vmatprep.subr.mxu0 %v2714_v1  ;;  %s2785_s8 = scalar_lea.vmem %s3840_s0, %s2626_s29  ;;  %v659_v32 = vld [vmem:[%s3841_s1 + $0x30] sm:$0xff]  ;;  %v658_v33 = vld [vmem:[%s3841_s1 + $0x28] sm:$0xff]  ;;  %v657_v37 = vld [vmem:[%s3841_s1 + $0x20] sm:$0xff]  ;;  %vm562_vm6 = vcmask 917248   ;;  %vm612_vm7 = vcmask 1048448   ;;  %vm807_vm8 = vcmask 261120  }
   0xf   : > { %703 = vmatpush1.msra.mxu0 %v667_v2  ;;  %v2359_v5 = vld [vmem:[%s2785_s8 + $0x120] sm:$0xff]  ;;  %v2351_v6 = vld [vmem:[%s2785_s8 + $0x90] sm:$0xff]  ;;  %v656_v39 = vld [vmem:[%s3841_s1 + $0x18] sm:$0xff]  ;;  %1018 = vst.msk [vmem:[#allocation4] sm:$0xff] %vm807_vm8, %v2714_v1  ;;  %vm2722_vm9 = vmmov 0   ;;  %vm858_vm10 = vcmask 1040384  }
  0x10   : > { %704 = vmatprep.subr.mxu0 %v2714_v1  ;;  %389 = vrot.lane.b32.xlu1 %v2359_v5, %s2715_s11  ;;  %v2367_v7 = vld [vmem:[%s2785_s8 + $0x1b0] sm:$0xff]  ;;  %v323_v9 = vld [vmem:[%s2785_s8 + $0x1] sm:$0xff]  ;;  %1022 = vst.msk [vmem:[#allocation4 + $0x90] sm:$0xff] %vm807_vm8, %v2714_v1  ;;  %vm1019_vm11 = vcmask 254976   ;;  %vm1024_vm12 = vcmask 253952   ;;  %vm1110_vm13 = vcmask 523520  }
  0x11   : > { %705 = vmatpush1.msra.mxu0 %v666_v3  ;;  %290 = vrot.lane.b32.xlu0 %v2351_v6, %s2716_s12  ;;  %v2383_v10 = vld [vmem:[%s2785_s8 + $0x10] sm:$0xff]  ;;  %v2806_v12 = vld [vmem:[%s2785_s8 + $0x21] sm:$0xff]  ;;  %1020 = vst.msk [vmem:[#allocation4 + $0x8] sm:$0x3] %vm1019_vm11, %v2714_v1  ;;  %1023 = vst.msk [vmem:[#allocation4 + $0x98] sm:$0x3] %vm1019_vm11, %v2714_v1 }
  0x12   : > { %706 = vmatprep.subr.mxu0 %v2714_v1  ;;  %v324_v11 = vld [vmem:[%s2785_s8 + $0x11] sm:$0xff]  ;;  %266 = vst.msk [vmem:[#allocation2 + $0x10] sm:$0xff] %vm264_vm0, %v2383_v10  ;;  %v2814_v14 = vld [vmem:[%s2785_s8 + $0x20] sm:$0xff]  ;;  %630 = vst.msk [vmem:[#allocation2 + $0x18] sm:$0xff] %vm264_vm0, %v2806_v12  ;;  %2565 = vmatprep.mubr.msk.f32.mxu1 %vm2722_vm9, %v2714_v1  ;;  %vm1159_vm14 = vcmask 785920   ;;  %vm1208_vm11 = vcmask 1048320  }
  0x13   : > { %707 = vmatpush1.msra.mxu0 %v665_v4  ;;  %629 = vst.msk [vmem:[#allocation2 + $0x8] sm:$0xff] %vm264_vm0, %v324_v11  ;;  %v2375_v15 = vld [vmem:[%s2785_s8 + $0x121] sm:$0xff]  ;;  %v2821_v17 = vld [vmem:[%s2785_s8 + $0x30] sm:$0xff]  ;;  %267 = vst.msk [vmem:[#allocation2 + $0x20] sm:$0xff] %vm264_vm0, %v2814_v14  ;;  %s2463_s19 = sshll.u32 %s3848_s22, 5 }
  0x14   : > { %708 = vmatprep.subr.mxu0 %v2714_v1  ;;  %439 = vrot.lane.b32.xlu1 %v2367_v7, %s2717_s17  ;;  %v2352_v16 = vld [vmem:[%s2785_s8 + $0xa0] sm:$0xff]  ;;  %v2827_v18 = vld [vmem:[%s2785_s8 + $0x31] sm:$0xff]  ;;  %268 = vst.msk [vmem:[#allocation2 + $0x30] sm:$0xff] %vm264_vm0, %v2821_v17  ;;  %v654_v42 = vld [vmem:[%s3841_s1 + $0x8] sm:$0xff]  ;;  %s251_s25 = scalar_lea.vmem %s3846_s6, %s2463_s19 }
  0x15   : > { %709 = vmatpush1.msra.mxu0 %v664_v8  ;;  %339 = vrot.lane.b32.xlu0 %v323_v9, %s2718_s18  ;;  %v2835_v20 = vld [vmem:[%s2785_s8 + $0x41] sm:$0xff]  ;;  %631 = vst.msk [vmem:[#allocation2 + $0x28] sm:$0xff] %vm264_vm0, %v2827_v18  ;;  %v2853_v23 = vld [vmem:[%s2785_s8 + $0x50] sm:$0xff] }
  0x16   : > { %710 = vmatprep.subr.mxu0 %v2714_v1  ;;  %v2843_v21 = vld [vmem:[%s2785_s8 + $0x40] sm:$0xff]  ;;  %632 = vst.msk [vmem:[#allocation2 + $0x38] sm:$0xff] %vm264_vm0, %v2835_v20  ;;  %v2856_v24 = vld [vmem:[%s2785_s8 + $0x51] sm:$0xff]  ;;  %270 = vst.msk [vmem:[#allocation2 + $0x50] sm:$0xff] %vm264_vm0, %v2853_v23 }
  0x17   : > { %711 = vmatpush1.msra.mxu0 %v663_v13  ;;  %269 = vst.msk [vmem:[#allocation2 + $0x40] sm:$0xff] %vm264_vm0, %v2843_v21  ;;  %v2860_v25 = vld [vmem:[%s2785_s8 + $0x61] sm:$0xff]  ;;  %633 = vst.msk [vmem:[#allocation2 + $0x48] sm:$0xff] %vm264_vm0, %v2856_v24  ;;  %v2360_v28 = vld [vmem:[%s2785_s8 + $0x130] sm:$0xff] }
  0x18   : > { %712 = vmatprep.subr.mxu0 %v2714_v1  ;;  %488 = vrot.lane.b32.xlu1 %v2375_v15, %s2719_s23  ;;  %634 = vst.msk [vmem:[#allocation2 + $0x58] sm:$0xff] %vm264_vm0, %v2860_v25  ;;  %v2875_v29 = vld [vmem:[%s2785_s8 + $0x60] sm:$0xff]  ;;  %v2880_v30 = vld [vmem:[%s2785_s8 + $0x70] sm:$0xff]  ;;  %v670_v45 = vld [vmem:[%s3841_s1 + $0x88] sm:$0xff] }
  0x19   : > { %292 = vrot.lane.b32.xlu0 %v2352_v16, %s2716_s12  ;;  %713 = vmatpush1.msra.mxu0 %v662_v19  ;;  %v2883_v31 = vld [vmem:[%s2785_s8 + $0x71] sm:$0xff]  ;;  %271 = vst.msk [vmem:[#allocation2 + $0x60] sm:$0xff] %vm264_vm0, %v2875_v29  ;;  %272 = vst.msk [vmem:[#allocation2 + $0x70] sm:$0xff] %vm264_vm0, %v2880_v30  ;;  %v2368_v35 = vld [vmem:[%s2785_s8 + $0x1c0] sm:$0xff] }
  0x1a   : > { %714 = vmatprep.subr.mxu0 %v2714_v1  ;;  %v638_v27 = vld [vmem:[#allocation2 + $0x8] sm:$0xff]  ;;  %635 = vst.msk [vmem:[#allocation2 + $0x68] sm:$0xff] %vm264_vm0, %v2883_v31  ;;  %v2353_v34 = vld [vmem:[%s2785_s8 + $0xb0] sm:$0xff]  ;;  %v256_v36 = vld [vmem:[%s2785_s8] sm:$0xff] }
  0x1b   : > { %715 = vmatpush1.msra.mxu0 %v661_v22  ;;  %2408 = vmatprep.mubr.msk.f32.mxu0 %vm264_vm0, %v638_v27  ;;  %265 = vst.msk [vmem:[#allocation2] sm:$0xff] %vm264_vm0, %v256_v36  ;;  %v2376_v38 = vld [vmem:[%s2785_s8 + $0x131] sm:$0xff]  ;;  %v2361_v41 = vld [vmem:[%s2785_s8 + $0x140] sm:$0xff] }
  0x1c   : > { %538 = vrot.lane.b32.xlu1 %v2383_v10, %s2720_s28  ;;  %716 = vmatprep.subr.mxu0 %v2714_v1  ;;  %v655_v40 = vld [vmem:[%s3841_s1 + $0x10] sm:$0xff]  ;;  %v653_v44 = vld [vmem:[%s3841_s1] sm:$0xff]  ;;  %1035 = vst.msk [vmem:[#allocation4 + $0x9] sm:$0x1] %vm1024_vm12, %v2714_v1  ;;  %1025 = vst.msk [vmem:[#allocation4] sm:$0x1] %vm1024_vm12, %v2714_v1 }
  0x1d   : > { %341 = vrot.lane.b32.xlu0 %v324_v11, %s2718_s18  ;;  %717 = vmatpush1.msra.mxu0 %v660_v26  ;;  %v2369_v43 = vld [vmem:[%s2785_s8 + $0x1d0] sm:$0xff]  ;;  %v2377_v46 = vld [vmem:[%s2785_s8 + $0x141] sm:$0xff]  ;;  %1026 = vst.msk [vmem:[#allocation4 + $0x10] sm:$0x1] %vm1024_vm12, %v2714_v1  ;;  %1027 = vst.msk [vmem:[#allocation4 + $0x20] sm:$0x1] %vm1024_vm12, %v2714_v1 }
  0x1e   : > { %718 = vmatprep.subr.mxu0 %v2714_v1  ;;  %v2354_v47 = vld [vmem:[%s2785_s8 + $0xc0] sm:$0xff]  ;;  %v2362_v49 = vld [vmem:[%s2785_s8 + $0x150] sm:$0xff]  ;;  %1028 = vst.msk [vmem:[#allocation4 + $0x30] sm:$0x1] %vm1024_vm12, %v2714_v1  ;;  %1029 = vst.msk [vmem:[#allocation4 + $0x40] sm:$0x1] %vm1024_vm12, %v2714_v1 }
  0x1f   : > { %719 = vmatpush1.msra.mxu0 %v659_v32  ;;  %v669_v48 = vld [vmem:[%s3841_s1 + $0x80] sm:$0xff]  ;;  %v2355_v50 = vld [vmem:[%s2785_s8 + $0xd0] sm:$0xff]  ;;  %1030 = vst.msk [vmem:[#allocation4 + $0x50] sm:$0x1] %vm1024_vm12, %v2714_v1  ;;  %1031 = vst.msk [vmem:[#allocation4 + $0x60] sm:$0x1] %vm1024_vm12, %v2714_v1 }
  0x20   : > { %588 = vrot.lane.b32.xlu1 %v2352_v16, %s2721_s7  ;;  %720 = vmatprep.subr.mxu0 %v2714_v1  ;;  %v2370_v51 = vld [vmem:[%s2785_s8 + $0x1e0] sm:$0xff]  ;;  %v2378_v52 = vld [vmem:[%s2785_s8 + $0x151] sm:$0xff]  ;;  %1032 = vst.msk [vmem:[#allocation4 + $0x70] sm:$0x1] %vm1024_vm12, %v2714_v1  ;;  %1033 = vst.msk [vmem:[#allocation4 + $0x80] sm:$0x1] %vm1024_vm12, %v2714_v1 }
  0x21   : > { %391 = vrot.lane.b32.xlu0 %v2360_v28, %s2715_s11  ;;  %721 = vmatpush1.msra.mxu0 %v658_v33  ;;  %v2363_v53 = vld [vmem:[%s2785_s8 + $0x160] sm:$0xff]  ;;  %v2371_v54 = vld [vmem:[%s2785_s8 + $0x1f0] sm:$0xff]  ;;  %1034 = vst.msk [vmem:[#allocation4 + $0x90] sm:$0x1] %vm1024_vm12, %v2714_v1  ;;  %1036 = vst.msk [vmem:[#allocation4 + $0x19] sm:$0x1] %vm1024_vm12, %v2714_v1 }
  0x22   : > { %722 = vmatprep.subr.mxu0 %v2714_v1  ;;  %v2379_v55 = vld [vmem:[%s2785_s8 + $0x161] sm:$0xff]  ;;  %v2364_v57 = vld [vmem:[%s2785_s8 + $0x170] sm:$0xff]  ;;  %1037 = vst.msk [vmem:[#allocation4 + $0x29] sm:$0x1] %vm1024_vm12, %v2714_v1  ;;  %1038 = vst.msk [vmem:[#allocation4 + $0x39] sm:$0x1] %vm1024_vm12, %v2714_v1 }
  0x23   : > { %723 = vmatpush1.msra.mxu0 %v657_v37  ;;  %v2356_v56 = vld [vmem:[%s2785_s8 + $0xe0] sm:$0xff]  ;;  %v2357_v58 = vld [vmem:[%s2785_s8 + $0xf0] sm:$0xff]  ;;  %1039 = vst.msk [vmem:[#allocation4 + $0x49] sm:$0x1] %vm1024_vm12, %v2714_v1  ;;  %1040 = vst.msk [vmem:[#allocation4 + $0x59] sm:$0x1] %vm1024_vm12, %v2714_v1 }
  0x24   : > { %294 = vrot.lane.b32.xlu1 %v2353_v34, %s2716_s12  ;;  %724 = vmatprep.subr.mxu0 %v2714_v1  ;;  %v2372_v59 = vld [vmem:[%s2785_s8 + $0x200] sm:$0xff]  ;;  %v2380_v60 = vld [vmem:[%s2785_s8 + $0x171] sm:$0xff]  ;;  %1041 = vst.msk [vmem:[#allocation4 + $0x69] sm:$0x1] %vm1024_vm12, %v2714_v1  ;;  %1042 = vst.msk [vmem:[#allocation4 + $0x79] sm:$0x1] %vm1024_vm12, %v2714_v1 }
  0x25   : > { %441 = vrot.lane.b32.xlu0 %v2368_v35, %s2717_s17  ;;  %725 = vmatpush1.msra.mxu0 %v656_v39  ;;  %v2365_v61 = vld [vmem:[%s2785_s8 + $0x180] sm:$0xff]  ;;  %v2373_v62 = vld [vmem:[%s2785_s8 + $0x210] sm:$0xff]  ;;  %1043 = vst.msk [vmem:[#allocation4 + $0x89] sm:$0x1] %vm1024_vm12, %v2714_v1  ;;  %1044 = vst.msk [vmem:[#allocation4 + $0x99] sm:$0x1] %vm1024_vm12, %v2714_v1 }
  0x26   : > { %726 = vmatprep.subr.mxu0 %v2714_v1  ;;  %v2381_v63 = vld [vmem:[%s2785_s8 + $0x181] sm:$0xff]  ;;  %v2366_v3 = vld [vmem:[%s2785_s8 + $0x190] sm:$0xff] }
  0x27   : > { %727 = vmatpush1.msra.mxu0 %v655_v40  ;;  %v2358_v0 = vld [vmem:[%s2785_s8 + $0x100] sm:$0xff]  ;;  %v2382_v5 = vld [vmem:[%s2785_s8 + $0x191] sm:$0xff] }
  0x28   : > { %343 = vrot.lane.b32.xlu1 %v2806_v12, %s2718_s18  ;;  %728 = vmatprep.subr.mxu0 %v2714_v1  ;;  %v2406_v2 = vld [vmem:[%s2785_s8 + $0x81] sm:$0xff]  ;;  %v2398_v7 = vld [vmem:[%s2785_s8 + $0x110] sm:$0xff] }
  0x29   : > { %490 = vrot.lane.b32.xlu0 %v2376_v38, %s2719_s23  ;;  %729 = vmatpush1.msra.mxu0 %v654_v42  ;;  %636 = vst.msk [vmem:[#allocation2 + $0x78] sm:$0xff] %vm264_vm0, %v2406_v2  ;;  %v2374_v4 = vld [vmem:[%s2785_s8 + $0x220] sm:$0xff]  ;;  %v644_v38 = vld [vmem:[#allocation2 + $0x38] sm:$0xff] }
  0x2a   : > { %730 = vmatprep.subr.mxu0 %v2714_v1  ;;  %v2390_v6 = vld [vmem:[%s2785_s8 + $0x80] sm:$0xff] }
  0x2b   : > { %731 = vmatpush1.msra.mxu0 %v653_v44 }
  0x2c   : > { %393 = vrot.lane.b32.xlu1 %v2361_v41, %s2715_s11  ;;  %760 = vmatprep.subr.mxu0 %v2714_v1 }
  0x2d   : > { %540 = vrot.lane.b32.xlu0 %v2814_v14, %s2720_s28  ;;  %761 = vmatpush2.msra.mxu0 %v670_v45 }
  0x2e   : > { %762 = vmatprep.subr.mxu0 %v2714_v1 }
  0x2f   : > { %763 = vmatpush2.msra.mxu0 %v669_v48  ;;  %v646_v48 = vld [vmem:[#allocation2 + $0x48] sm:$0xff] }
  0x30   : > { %443 = vrot.lane.b32.xlu1 %v2369_v43, %s2717_s17 }
  0x31   : > { %590 = vrot.lane.b32.xlu0 %v2353_v34, %s2721_s7 }
  0x34   : > { %492 = vrot.lane.b32.xlu1 %v2377_v46, %s2719_s23 }
  0x35   : > { %296 = vrot.lane.b32.xlu0 %v2354_v47, %s2716_s12 }
  0x38   : > { %542 = vrot.lane.b32.xlu1 %v2821_v17, %s2720_s28 }
  0x39   : > { %345 = vrot.lane.b32.xlu0 %v2827_v18, %s2718_s18 }
  0x3c   : > { %592 = vrot.lane.b32.xlu1 %v2354_v47, %s2721_s7 }
  0x3d   : > { %395 = vrot.lane.b32.xlu0 %v2362_v49, %s2715_s11 }
  0x40   : > { %298 = vrot.lane.b32.xlu1 %v2355_v50, %s2716_s12 }
  0x41   : > { %445 = vrot.lane.b32.xlu0 %v2370_v51, %s2717_s17 }
  0x44   : > { %347 = vrot.lane.b32.xlu1 %v2835_v20, %s2718_s18  ;;  %v640_v20 = vld [vmem:[#allocation2 + $0x18] sm:$0xff] }
  0x45   : > { %494 = vrot.lane.b32.xlu0 %v2378_v52, %s2719_s23 }
  0x48   : > { %397 = vrot.lane.b32.xlu1 %v2363_v53, %s2715_s11 }
  0x49   : > { %544 = vrot.lane.b32.xlu0 %v2843_v21, %s2720_s28 }
  0x4c   : > { %447 = vrot.lane.b32.xlu1 %v2371_v54, %s2717_s17 }
  0x4d   : > { %594 = vrot.lane.b32.xlu0 %v2355_v50, %s2721_s7 }
  0x50   : > { %496 = vrot.lane.b32.xlu1 %v2379_v55, %s2719_s23 }
  0x51   : > { %300 = vrot.lane.b32.xlu0 %v2356_v56, %s2716_s12 }
  0x54   : > { %546 = vrot.lane.b32.xlu1 %v2853_v23, %s2720_s28 }
  0x55   : > { %349 = vrot.lane.b32.xlu0 %v2856_v24, %s2718_s18 }
  0x58   : > { %596 = vrot.lane.b32.xlu1 %v2356_v56, %s2721_s7  ;;  %v648_v56 = vld [vmem:[#allocation2 + $0x58] sm:$0xff] }
  0x59   : > { %399 = vrot.lane.b32.xlu0 %v2364_v57, %s2715_s11 }
  0x5c   : > { %302 = vrot.lane.b32.xlu1 %v2357_v58, %s2716_s12 }
  0x5d   : > { %449 = vrot.lane.b32.xlu0 %v2372_v59, %s2717_s17 }
  0x60   : > { %351 = vrot.lane.b32.xlu1 %v2860_v25, %s2718_s18 }
  0x61   : > { %498 = vrot.lane.b32.xlu0 %v2380_v60, %s2719_s23 }
  0x64   : > { %401 = vrot.lane.b32.xlu1 %v2365_v61, %s2715_s11 }
  0x65   : > { %548 = vrot.lane.b32.xlu0 %v2875_v29, %s2720_s28 }
  0x68   : > { %451 = vrot.lane.b32.xlu1 %v2373_v62, %s2717_s17 }
  0x69   : > { %598 = vrot.lane.b32.xlu0 %v2357_v58, %s2721_s7 }
  0x6c   : > { %500 = vrot.lane.b32.xlu1 %v2381_v63, %s2719_s23 }
  0x6d   : > { %304 = vrot.lane.b32.xlu0 %v2358_v0, %s2716_s12 }
  0x70   : > { %550 = vrot.lane.b32.xlu1 %v2880_v30, %s2720_s28  ;;  %v642_v30 = vld [vmem:[#allocation2 + $0x28] sm:$0xff] }
  0x71   : > { %353 = vrot.lane.b32.xlu0 %v2883_v31, %s2718_s18 }
  0x74   : > { %600 = vrot.lane.b32.xlu1 %v2358_v0, %s2721_s7 }
  0x75   : > { %403 = vrot.lane.b32.xlu0 %v2366_v3, %s2715_s11  ;;  %v650_v3 = vld [vmem:[#allocation2 + $0x68] sm:$0xff] }
  0x78   : > { %502 = vrot.lane.b32.xlu1 %v2382_v5, %s2719_s23 }
  0x79   : > { %453 = vrot.lane.b32.xlu0 %v2374_v4, %s2717_s17 }
  0x7c   : > { %602 = vrot.lane.b32.xlu1 %v2398_v7, %s2721_s7 }
  0x7d   : > { %552 = vrot.lane.b32.xlu0 %v2390_v6, %s2720_s28 }
  0x82   : > { %v390_v8 = vpop.permute.xlu1 %389 }
  0x83   : > { %v291_v9 = vpop.permute.xlu0 %290 }
  0x84   : > { %315 = vst.msk [vmem:[#allocation2] sm:$0xff] %vm314_vm1, %v291_v9 }
  0x86   : > { %v440_v10 = vpop.permute.xlu1 %439 }
  0x87   : > { %v340_v11 = vpop.permute.xlu0 %339 }
  0x88   : > { %364 = vst.msk [vmem:[#allocation2] sm:$0xff] %vm363_vm2, %v340_v11  ;;  %v652_v11 = vld [vmem:[#allocation2 + $0x78] sm:$0xff] }
  0x89   : > { %414 = vst.msk [vmem:[#allocation2] sm:$0xff] %vm413_vm3, %v390_v8 }
  0x8a   : > { %464 = vst.msk [vmem:[#allocation2] sm:$0xff] %vm463_vm4, %v440_v10  ;;  %v489_v12 = vpop.permute.xlu1 %488 }
  0x8b   : > { %v293_v13 = vpop.permute.xlu0 %292  ;;  %513 = vst.msk [vmem:[#allocation2] sm:$0xff] %vm512_vm5, %v489_v12 }
  0x8c   : > { %316 = vst.msk [vmem:[#allocation2 + $0x10] sm:$0xff] %vm314_vm1, %v293_v13 }
  0x8e   : > { %v539_v14 = vpop.permute.xlu1 %538 }
  0x8f   : > { %v342_v15 = vpop.permute.xlu0 %341  ;;  %563 = vst.msk [vmem:[#allocation2] sm:$0xff] %vm562_vm6, %v539_v14 }
  0x90   : > { %365 = vst.msk [vmem:[#allocation2 + $0x10] sm:$0xff] %vm363_vm2, %v342_v15 }
  0x92   : > { %v589_v16 = vpop.permute.xlu1 %588 }
  0x93   : > { %v392_v17 = vpop.permute.xlu0 %391  ;;  %613 = vst.msk [vmem:[#allocation2] sm:$0xff] %vm612_vm7, %v589_v16  ;;  %v3089_v16 = vld [vmem:[%s3844_s4 + $0x18] sm:$0xff] }
  0x94   : > { %415 = vst.msk [vmem:[#allocation2 + $0x10] sm:$0xff] %vm413_vm3, %v392_v17  ;;  %v3094_v17 = vld [vmem:[%s3844_s4 + $0x10] sm:$0xff]  ;;  %2558 = vmatpush3.msra.mxu1 %v3089_v16 }
  0x95   : > { %2559 = vmatprep.subr.mxu1 %v2714_v1 }
  0x96   : > { %v295_v18 = vpop.permute.xlu1 %294  ;;  %2560 = vmatpush3.msra.mxu1 %v3094_v17 }
  0x97   : > { %v442_v19 = vpop.permute.xlu0 %441  ;;  %317 = vst.msk [vmem:[#allocation2 + $0x20] sm:$0xff] %vm314_vm1, %v295_v18  ;;  %v3103_v18 = vld [vmem:[%s3844_s4 + $0x8] sm:$0xff]  ;;  %2561 = vmatprep.subr.mxu1 %v2714_v1 }
  0x98   : > { %465 = vst.msk [vmem:[#allocation2 + $0x10] sm:$0xff] %vm463_vm4, %v442_v19  ;;  %v3110_v19 = vld [vmem:[%s3844_s4] sm:$0xff]  ;;  %2562 = vmatpush3.msra.mxu1 %v3103_v18 }
  0x99   : > { %2563 = vmatprep.subr.mxu1 %v2714_v1 }
  0x9a   : > { %v344_v21 = vpop.permute.xlu1 %343  ;;  %v637_v23 = vld [vmem:[#allocation2] sm:$0xff]  ;;  %2564 = vmatpush3.msra.mxu1 %v3110_v19 }
  0x9b   : > { %v491_v22 = vpop.permute.xlu0 %490  ;;  %366 = vst.msk [vmem:[#allocation2 + $0x20] sm:$0xff] %vm363_vm2, %v344_v21  ;;  %765 = vmatmul.mubr.f32.vlgmr.msra.gmra.mxu0 %v637_v23 }
  0x9c   : > { %514 = vst.msk [vmem:[#allocation2 + $0x10] sm:$0xff] %vm512_vm5, %v491_v22  ;;  %2409 = vmatprep.mubr.msk.f32.mxu0 %vm264_vm0, %v640_v20 }
  0x9e   : > { %v394_v24 = vpop.permute.xlu1 %393 }
  0x9f   : > { %v541_v25 = vpop.permute.xlu0 %540  ;;  %416 = vst.msk [vmem:[#allocation2 + $0x20] sm:$0xff] %vm413_vm3, %v394_v24 }
  0xa0   : > { %564 = vst.msk [vmem:[#allocation2 + $0x10] sm:$0xff] %vm562_vm6, %v541_v25 }
  0xa2   : > { %v444_v26 = vpop.permute.xlu1 %443 }
  0xa3   : > { %v591_v27 = vpop.permute.xlu0 %590  ;;  %466 = vst.msk [vmem:[#allocation2 + $0x20] sm:$0xff] %vm463_vm4, %v444_v26 }
  0xa4   : > { %614 = vst.msk [vmem:[#allocation2 + $0x10] sm:$0xff] %vm612_vm7, %v591_v27 }
  0xa6   : > { %v493_v28 = vpop.permute.xlu1 %492 }
  0xa7   : > { %v297_v29 = vpop.permute.xlu0 %296  ;;  %515 = vst.msk [vmem:[#allocation2 + $0x20] sm:$0xff] %vm512_vm5, %v493_v28 }
  0xa8   : > { %318 = vst.msk [vmem:[#allocation2 + $0x30] sm:$0xff] %vm314_vm1, %v297_v29 }
  0xaa   : > { %v543_v31 = vpop.permute.xlu1 %542 }
  0xab   : > { %v346_v32 = vpop.permute.xlu0 %345  ;;  %v639_v33 = vld [vmem:[#allocation2 + $0x10] sm:$0xff]  ;;  %565 = vst.msk [vmem:[#allocation2 + $0x20] sm:$0xff] %vm562_vm6, %v543_v31  ;;  %v2407_v31 = vld [vmem:[%s3845_s5] ss:$0 sm:$0xff] }
  0xac   : > { %367 = vst.msk [vmem:[#allocation2 + $0x30] sm:$0xff] %vm363_vm2, %v346_v32  ;;  %770 = vmatmul.mubr.f32.gmra.mxu0 %v639_v33 }
  0xad   : > { %2410 = vmatprep.mubr.msk.f32.mxu0 %vm264_vm0, %v642_v30 }
  0xae   : > { %v593_v34 = vpop.permute.xlu1 %592 }
  0xaf   : > { %v396_v35 = vpop.permute.xlu0 %395  ;;  %615 = vst.msk [vmem:[#allocation2 + $0x20] sm:$0xff] %vm612_vm7, %v593_v34 }
  0xb0   : > { %417 = vst.msk [vmem:[#allocation2 + $0x30] sm:$0xff] %vm413_vm3, %v396_v35 }
  0xb2   : > { %v299_v36 = vpop.permute.xlu1 %298 }
  0xb3   : > { %v446_v37 = vpop.permute.xlu0 %445  ;;  %319 = vst.msk [vmem:[#allocation2 + $0x40] sm:$0xff] %vm314_vm1, %v299_v36 }
  0xb4   : > { %467 = vst.msk [vmem:[#allocation2 + $0x30] sm:$0xff] %vm463_vm4, %v446_v37 }
  0xb6   : > { %v348_v39 = vpop.permute.xlu1 %347  ;;  %v641_v41 = vld [vmem:[#allocation2 + $0x20] sm:$0xff] }
  0xb7   : > { %v495_v40 = vpop.permute.xlu0 %494  ;;  %368 = vst.msk [vmem:[#allocation2 + $0x40] sm:$0xff] %vm363_vm2, %v348_v39  ;;  %775 = vmatmul.mubr.f32.gmra.mxu0 %v641_v41 }
  0xb8   : > { %516 = vst.msk [vmem:[#allocation2 + $0x30] sm:$0xff] %vm512_vm5, %v495_v40  ;;  %2411 = vmatprep.mubr.msk.f32.mxu0 %vm264_vm0, %v644_v38 }
  0xba   : > { %v398_v42 = vpop.permute.xlu1 %397 }
  0xbb   : > { %v545_v43 = vpop.permute.xlu0 %544  ;;  %418 = vst.msk [vmem:[#allocation2 + $0x40] sm:$0xff] %vm413_vm3, %v398_v42 }
  0xbc   : > { %566 = vst.msk [vmem:[#allocation2 + $0x30] sm:$0xff] %vm562_vm6, %v545_v43 }
  0xbe   : > { %v448_v44 = vpop.permute.xlu1 %447 }
  0xbf   : > { %v595_v45 = vpop.permute.xlu0 %594  ;;  %468 = vst.msk [vmem:[#allocation2 + $0x40] sm:$0xff] %vm463_vm4, %v448_v44 }
  0xc0   : > { %616 = vst.msk [vmem:[#allocation2 + $0x30] sm:$0xff] %vm612_vm7, %v595_v45 }
  0xc2   : > { %v497_v46 = vpop.permute.xlu1 %496 }
  0xc3   : > { %v301_v47 = vpop.permute.xlu0 %300  ;;  %517 = vst.msk [vmem:[#allocation2 + $0x40] sm:$0xff] %vm512_vm5, %v497_v46 }
  0xc4   : > { %320 = vst.msk [vmem:[#allocation2 + $0x50] sm:$0xff] %vm314_vm1, %v301_v47 }
  0xc6   : > { %v547_v49 = vpop.permute.xlu1 %546 }
  0xc7   : > { %v350_v50 = vpop.permute.xlu0 %349  ;;  %v643_v51 = vld [vmem:[#allocation2 + $0x30] sm:$0xff]  ;;  %567 = vst.msk [vmem:[#allocation2 + $0x40] sm:$0xff] %vm562_vm6, %v547_v49 }
  0xc8   : > { %369 = vst.msk [vmem:[#allocation2 + $0x50] sm:$0xff] %vm363_vm2, %v350_v50  ;;  %780 = vmatmul.mubr.f32.gmra.mxu0 %v643_v51 }
  0xc9   : > { %2412 = vmatprep.mubr.msk.f32.mxu0 %vm264_vm0, %v646_v48 }
  0xca   : > { %v597_v52 = vpop.permute.xlu1 %596 }
  0xcb   : > { %v400_v53 = vpop.permute.xlu0 %399  ;;  %617 = vst.msk [vmem:[#allocation2 + $0x40] sm:$0xff] %vm612_vm7, %v597_v52 }
  0xcc   : > { %419 = vst.msk [vmem:[#allocation2 + $0x50] sm:$0xff] %vm413_vm3, %v400_v53 }
  0xce   : > { %v303_v54 = vpop.permute.xlu1 %302 }
  0xcf   : > { %v450_v55 = vpop.permute.xlu0 %449  ;;  %321 = vst.msk [vmem:[#allocation2 + $0x60] sm:$0xff] %vm314_vm1, %v303_v54 }
  0xd0   : > { %469 = vst.msk [vmem:[#allocation2 + $0x50] sm:$0xff] %vm463_vm4, %v450_v55 }
  0xd2   : > { %v352_v57 = vpop.permute.xlu1 %351  ;;  %v645_v59 = vld [vmem:[#allocation2 + $0x40] sm:$0xff] }
  0xd3   : > { %v499_v58 = vpop.permute.xlu0 %498  ;;  %370 = vst.msk [vmem:[#allocation2 + $0x60] sm:$0xff] %vm363_vm2, %v352_v57  ;;  %785 = vmatmul.mubr.f32.gmra.mxu0 %v645_v59 }
  0xd4   : > { %518 = vst.msk [vmem:[#allocation2 + $0x50] sm:$0xff] %vm512_vm5, %v499_v58  ;;  %2413 = vmatprep.mubr.msk.f32.mxu0 %vm264_vm0, %v648_v56 }
  0xd6   : > { %v402_v60 = vpop.permute.xlu1 %401 }
  0xd7   : > { %v549_v61 = vpop.permute.xlu0 %548  ;;  %420 = vst.msk [vmem:[#allocation2 + $0x60] sm:$0xff] %vm413_vm3, %v402_v60 }
  0xd8   : > { %568 = vst.msk [vmem:[#allocation2 + $0x50] sm:$0xff] %vm562_vm6, %v549_v61 }
  0xda   : > { %v452_v62 = vpop.permute.xlu1 %451 }
  0xdb   : > { %v599_v63 = vpop.permute.xlu0 %598  ;;  %470 = vst.msk [vmem:[#allocation2 + $0x60] sm:$0xff] %vm463_vm4, %v452_v62 }
  0xdc   : > { %618 = vst.msk [vmem:[#allocation2 + $0x50] sm:$0xff] %vm612_vm7, %v599_v63 }
  0xde   : > { %v501_v0 = vpop.permute.xlu1 %500 }
  0xdf   : > { %v305_v2 = vpop.permute.xlu0 %304  ;;  %519 = vst.msk [vmem:[#allocation2 + $0x60] sm:$0xff] %vm512_vm5, %v501_v0 }
  0xe0   : > { %322 = vst.msk [vmem:[#allocation2 + $0x70] sm:$0xff] %vm314_vm1, %v305_v2 }
  0xe2   : > { %v551_v4 = vpop.permute.xlu1 %550 }
  0xe3   : > { %v354_v5 = vpop.permute.xlu0 %353  ;;  %v647_v6 = vld [vmem:[#allocation2 + $0x50] sm:$0xff]  ;;  %569 = vst.msk [vmem:[#allocation2 + $0x60] sm:$0xff] %vm562_vm6, %v551_v4 }
  0xe4   : > { %371 = vst.msk [vmem:[#allocation2 + $0x70] sm:$0xff] %vm363_vm2, %v354_v5  ;;  %790 = vmatmul.mubr.f32.gmra.mxu0 %v647_v6 }
  0xe5   : > { %2414 = vmatprep.mubr.msk.f32.mxu0 %vm264_vm0, %v650_v3 }
  0xe6   : > { %v601_v7 = vpop.permute.xlu1 %600 }
  0xe7   : > { %v404_v8 = vpop.permute.xlu0 %403  ;;  %619 = vst.msk [vmem:[#allocation2 + $0x60] sm:$0xff] %vm612_vm7, %v601_v7 }
  0xe8   : > { %421 = vst.msk [vmem:[#allocation2 + $0x70] sm:$0xff] %vm413_vm3, %v404_v8 }
  0xea   : > { %v503_v10 = vpop.permute.xlu1 %502 }
  0xeb   : > { %v454_v9 = vpop.permute.xlu0 %453 }
  0xec   : > { %471 = vst.msk [vmem:[#allocation2 + $0x70] sm:$0xff] %vm463_vm4, %v454_v9 }
  0xed   : > { %520 = vst.msk [vmem:[#allocation2 + $0x70] sm:$0xff] %vm512_vm5, %v503_v10 }
  0xee   : > { %v603_v13 = vpop.permute.xlu1 %602  ;;  %v649_v14 = vld [vmem:[#allocation2 + $0x60] sm:$0xff] }
  0xef   : > { %v553_v12 = vpop.permute.xlu0 %552  ;;  %795 = vmatmul.mubr.f32.gmra.mxu0 %v649_v14 }
  0xf0   : > { %570 = vst.msk [vmem:[#allocation2 + $0x70] sm:$0xff] %vm562_vm6, %v553_v12  ;;  %2415 = vmatprep.mubr.msk.f32.mxu0 %vm264_vm0, %v652_v11 }
  0xf1   : > { %620 = vst.msk [vmem:[#allocation2 + $0x70] sm:$0xff] %vm612_vm7, %v603_v13 }
  0xf8   : > { %v651_v15 = vld [vmem:[#allocation2 + $0x70] sm:$0xff] }
  0xf9   : > { %800 = vmatmul.mubr.f32.gmra.mxu0 %v651_v15 }
 0x15b   : > { %v766_v20 = vpop.f32.mrf.mxu0 }
 0x15c   : > { %v3120_v34 = vadd.f32 %v2407_v31, %v766_v20 }
 0x15d   : > { %v768_v21 = vpop.f32.mrf.mxu0 }
 0x15e   : > { %v829_v38 = vmul.f32 %v3120_v34, %v3120_v34  ;;  %v808_v42 = vsel %vm807_vm8, %v3120_v34, 0.0 }
 0x160   : > { %v837_v48 = vsel %vm807_vm8, %v829_v38, 0.0 }
 0x16c   : > { %v771_v22 = vpop.f32.mrf.mxu0 }
 0x16d   : > { %v3118_v33 = vadd.f32 %v2407_v31, %v771_v22 }
 0x16e   : > { %v773_v23 = vpop.f32.mrf.mxu0 }
 0x16f   : > { %v830_v36 = vmul.f32 %v3118_v33, %v3118_v33  ;;  %v809_v39 = vsel %vm807_vm8, %v3118_v33, 0.0 }
 0x170   : > { %v810_v49 = vadd.f32 %v809_v39, %v808_v42  ;;  %v1070_v42 = vld [vmem:[#allocation4 + $0x1] sm:$0xff] }
 0x171   : > { %v838_v43 = vsel %vm807_vm8, %v830_v36, 0.0  ;;  %1086 = vrot.lane.b32.xlu1 %v1070_v42, %s2718_s18 }
 0x172   : > { %v839_v55 = vadd.f32 %v838_v43, %v837_v48  ;;  %v1119_v43 = vld [vmem:[#allocation4 + $0x2] sm:$0xff] }
 0x173   : > { %v1451_v48 = vld [vmem:[%s3842_s2 + $0x108] sm:$0xff] }
 0x175   : > { %1135 = vrot.lane.b32.xlu1 %v1119_v43, %s2717_s17  ;;  %v1429_v43 = vld [vmem:[%s3842_s2 + $0x58] sm:$0xff] }
 0x177   : > { %v776_v24 = vpop.f32.mrf.mxu0 }
 0x178   : > { %v3122_v35 = vadd.f32 %v2407_v31, %v776_v24 }
 0x179   : > { %v778_v25 = vpop.f32.mrf.mxu0 }
 0x17a   : > { %v831_v40 = vmul.f32 %v3122_v35, %v3122_v35  ;;  %v811_v44 = vsel %vm807_vm8, %v3122_v35, 0.0 }
 0x17b   : > { %v812_v56 = vadd.f32 %v811_v44, %v810_v49  ;;  %v1289_v44 = vld [vmem:[#allocation4 + $0x90] sm:$0xff]  ;;  %v1450_v49 = vld [vmem:[%s3842_s2 + $0x100] sm:$0xff] }
 0x17c   : > { %v840_v50 = vsel %vm807_vm8, %v831_v40, 0.0  ;;  %1312 = vrot.lane.b32.xlu0 %v1289_v44, %s2717_s17 }
 0x17d   : > { %v841_v60 = vadd.f32 %v840_v50, %v839_v55 }
 0x188   : > { %v781_v26 = vpop.f32.mrf.mxu0 }
 0x189   : > { %v3126_v37 = vadd.f32 %v2407_v31, %v781_v26 }
 0x18a   : > { %v783_v27 = vpop.f32.mrf.mxu0 }
 0x18b   : > { %v832_v45 = vmul.f32 %v3126_v37, %v3126_v37  ;;  %v813_v51 = vsel %vm807_vm8, %v3126_v37, 0.0 }
 0x18c   : > { %v814_v61 = vadd.f32 %v813_v51, %v812_v56 }
 0x18d   : > { %v842_v57 = vsel %vm807_vm8, %v832_v45, 0.0  ;;  %v1453_v45 = vld [vmem:[%s3842_s2 + $0x118] sm:$0xff] }
 0x18e   : > { %v843_v2 = vadd.f32 %v842_v57, %v841_v60  ;;  %2568 = vmatprep.subr.mxu0 %v1453_v45  ;;  %v946_v57 = vlaneseq  ;;  %v805_v60 = vld [vmem:[%s3845_s5 + $0x1] sm:$0x1] }
 0x18f   : > { %2569 = vmatpush3.msra.mxu0 %v1453_v45 }
 0x193   : > { %v786_v28 = vpop.f32.mrf.mxu0 }
 0x194   : > { %v3134_v41 = vadd.f32 %v2407_v31, %v786_v28 }
 0x195   : > { %v788_v29 = vpop.f32.mrf.mxu0 }
 0x196   : > { %v833_v52 = vmul.f32 %v3134_v41, %v3134_v41  ;;  %v815_v58 = vsel %vm807_vm8, %v3134_v41, 0.0 }
 0x197   : > { %v816_v3 = vadd.f32 %v815_v58, %v814_v61  ;;  %v947_v58 = vshrl.u32 %v946_v57, 7  ;;  %v1442_v57 = vld [vmem:[%s3842_s2 + $0xc0] sm:$0xff] }
 0x198   : > { %v844_v62 = vsel %vm807_vm8, %v833_v52, 0.0 }
 0x199   : > { %v845_v6 = vadd.f32 %v844_v62, %v843_v2  ;;  %v3237_v62 = vsub.s32 0, %v947_v58 }
 0x1a4   : > { %v791_v30 = vpop.f32.mrf.mxu0 }
 0x1a5   : > { %v3143_v46 = vadd.f32 %v2407_v31, %v791_v30 }
 0x1a6   : > { %v793_v32 = vpop.f32.mrf.mxu0 }
 0x1a7   : > { %v834_v59 = vmul.f32 %v3143_v46, %v3143_v46  ;;  %v817_v63 = vsel %vm807_vm8, %v3143_v46, 0.0 }
 0x1a8   : > { %v818_v7 = vadd.f32 %v817_v63, %v816_v3 }
 0x1a9   : > { %v846_v4 = vsel %vm807_vm8, %v834_v59, 0.0 }
 0x1aa   : > { %v847_v11 = vadd.f32 %v846_v4, %v845_v6 }
 0x1af   : > { %v796_v47 = vpop.f32.mrf.mxu0 }
 0x1b0   : > { %v3151_v53 = vadd.f32 %v2407_v31, %v796_v47  ;;  %v1452_v47 = vld [vmem:[%s3842_s2 + $0x110] sm:$0xff] }
 0x1b1   : > { %v798_v54 = vpop.f32.mrf.mxu0  ;;  %2570 = vmatprep.subr.mxu0 %v1452_v47 }
 0x1b2   : > { %v835_v0 = vmul.f32 %v3151_v53, %v3151_v53  ;;  %v819_v5 = vsel %vm807_vm8, %v3151_v53, 0.0  ;;  %2571 = vmatpush3.msra.mxu0 %v1452_v47  ;;  %v1444_v47 = vld [vmem:[%s3842_s2 + $0xd0] sm:$0xff] }
 0x1b3   : > { %v820_v12 = vadd.f32 %v819_v5, %v818_v7  ;;  %2572 = vmatprep.subr.mxu0 %v1451_v48 }
 0x1b4   : > { %v848_v9 = vsel %vm807_vm8, %v835_v0, 0.0  ;;  %2573 = vmatpush3.msra.mxu0 %v1451_v48  ;;  %v806_v0 = vld [vmem:[%s3845_s5 + $0x2] sm:$0x1] }
 0x1b5   : > { %v849_v20 = vadd.f32 %v848_v9, %v847_v11  ;;  %2574 = vmatprep.subr.mxu0 %v1450_v49  ;;  %v1449_v11 = vld [vmem:[%s3842_s2 + $0xf8] sm:$0xff] }
 0x1b6   : > { %2575 = vmatpush3.msra.mxu0 %v1450_v49  ;;  %2469 = vmatprep.subr.mxu1 %v1449_v11  ;;  %v1428_v49 = vld [vmem:[%s3842_s2 + $0x50] sm:$0xff] }
 0x1b7   : > { %2615 = vmatprep.subr.mxu0 %v2714_v1 }
 0x1b9   : > { %v801_v8 = vpop.f32.mrf.mxu0 }
 0x1ba   : > { %v3167_v10 = vadd.f32 %v2407_v31, %v801_v8 }
 0x1bb   : > { %v803_v13 = vpop.f32.mrf.mxu0 }
 0x1bc   : > { %v821_v14 = vsel %vm807_vm8, %v3167_v10, 0.0  ;;  %v836_v15 = vmul.f32 %v3167_v10, %v3167_v10  ;;  %v1432_v13 = vld [vmem:[%s3842_s2 + $0x70] sm:$0xff] }
 0x1bd   : > { %v822_v21 = vadd.f32 %v821_v14, %v820_v12  ;;  %v1433_v12 = vld [vmem:[%s3842_s2 + $0x78] sm:$0xff] }
 0x1be   : > { %v850_v22 = vsel %vm807_vm8, %v836_v15, 0.0 }
 0x1bf   : > { %v823_v23 = vrot.slane %v822_v21, 4  ;;  %v851_v24 = vadd.f32 %v850_v22, %v849_v20 }
 0x1c1   : > { %v824_v25 = vadd.f32 %v823_v23, %v822_v21  ;;  %v852_v26 = vrot.slane %v851_v24, 4 }
 0x1c3   : > { %v825_v27 = vrot.slane %v824_v25, 2  ;;  %v853_v28 = vadd.f32 %v852_v26, %v851_v24  ;;  %v1446_v26 = vld [vmem:[%s3842_s2 + $0xe0] sm:$0xff] }
 0x1c5   : > { %v826_v29 = vadd.f32 %v825_v27, %v824_v25  ;;  %v854_v30 = vrot.slane %v853_v28, 2  ;;  %v1431_v25 = vld [vmem:[%s3842_s2 + $0x68] sm:$0xff] }
 0x1c7   : > { %v827_v31 = vrot.slane %v826_v29, 1  ;;  %v855_v32 = vadd.f32 %v854_v30, %v853_v28 }
 0x1c9   : > { %v856_v36 = vrot.slane %v855_v32, 1  ;;  %v828_v38 = vadd.f32 %v827_v31, %v826_v29  ;;  %v1430_v29 = vld [vmem:[%s3842_s2 + $0x60] sm:$0xff] }
 0x1cb   : > { %v857_v39 = vadd.f32 %v856_v36, %v855_v32 }
 0x1cd   : > { %v859_v40 = vsel %vm858_vm10, %v828_v38, %v857_v39  ;;  %v1445_v38 = vld [vmem:[%s3842_s2 + $0xd8] sm:$0xff] }
 0x1ce   : > { %2566 = vmatmul.mubr.msk.f32.vlgmr.msra.gmra.mxu1 %vm807_vm8, %v859_v40 }
 0x1cf   : > { %2470 = vmatpush3.msra.mxu1 %v1433_v12 }
 0x1e3   : > { %v1087_v58 = vpop.permute.xlu1 %1086 }
 0x28e   : > { %v929_v50 = vpop.f32.mrf.mxu1 }
 0x28f   : > { %v933_v51 = vmul.f32 %v929_v50, %v929_v50 }
 0x290   : > { %v2567_v52 = vpop.f32.mrf.mxu1 }
 0x291   : > { %v935_v54 = vrot.slane %v933_v51, 7  ;;  %v1443_v52 = vld [vmem:[%s3842_s2 + $0xc8] sm:$0xff] }
 0x293   : > { %v937_v55 = vsub.f32 %v929_v50, %v935_v54 }
 0x295   : > { %v938_v56 = vadd.f32 1e-05, %v937_v55  ;;  %v1427_v55 = vld [vmem:[%s3842_s2 + $0x48] sm:$0xff] }
 0x297   : > { %2644 = vrsqrt.f32 %v938_v56 }
 0x2a4   : > { %v2645_v59 = vpop.eup %2644 }
 0x2a5   : > { %v941_v61 = vrot.slane %v2645_v59, 1  ;;  %v1136_v59 = vpop.permute.xlu1 %1135 }
 0x2a7   : > { %v943_v63 = vmul.f32 %v941_v61, %v805_v60 }
 0x2a9   : > { %v944_v2 = vmul.f32 %v943_v63, %v929_v50  ;;  %v949_v3 = vrot.slane %v943_v63, %v3237_v62 }
 0x2ab   : > { %v945_v4 = vsub.f32 %v806_v0, %v944_v2  ;;  %v952_v5 = vmul.f32 %v949_v3, %v3122_v35  ;;  %v953_v6 = vmul.f32 %v949_v3, %v3126_v37  ;;  %v954_v7 = vmul.f32 %v949_v3, %v3134_v41  ;;  %v1448_v35 = vld [vmem:[%s3842_s2 + $0xf0] sm:$0xff] }
 0x2ac   : > { %v955_v8 = vmul.f32 %v949_v3, %v3143_v46  ;;  %v950_v37 = vmul.f32 %v949_v3, %v3120_v34  ;;  %v956_v41 = vmul.f32 %v949_v3, %v3151_v53  ;;  %v957_v46 = vmul.f32 %v949_v3, %v3167_v10  ;;  %v1447_v34 = vld [vmem:[%s3842_s2 + $0xe8] sm:$0xff]  ;;  %v1054_v53 = vld [vmem:[#allocation4] sm:$0xff]  ;;  %2471 = vmatprep.subr.mxu1 %v1448_v35 }
 0x2ad   : > { %v961_v9 = vrot.slane %v945_v4, %v3237_v62  ;;  %v951_v10 = vmul.f32 %v949_v3, %v3118_v33  ;;  %1062 = vst.msk [vmem:[#allocation3] sm:$0xff] %vm807_vm8, %v1054_v53  ;;  %2472 = vmatpush3.msra.mxu1 %v1432_v13  ;;  %v1426_v35 = vld [vmem:[%s3842_s2 + $0x40] sm:$0xff] }
 0x2ae   : > { %2473 = vmatprep.subr.mxu1 %v1447_v34  ;;  %1111 = vst.msk [vmem:[#allocation3] sm:$0xff] %vm1110_vm13, %v1087_v58  ;;  %v1437_v58 = vld [vmem:[%s3842_s2 + $0x98] sm:$0xff] }
 0x2af   : > { %v3263_v14 = vadd.f32 %v961_v9, %v952_v5  ;;  %v3265_v15 = vadd.f32 %v961_v9, %v953_v6  ;;  %v3267_v20 = vadd.f32 %v961_v9, %v954_v7  ;;  %v3269_v21 = vadd.f32 %v961_v9, %v955_v8  ;;  %2474 = vmatpush3.msra.mxu1 %v1431_v25 }
 0x2b0   : > { %v3275_v22 = vadd.f32 %v961_v9, %v956_v41  ;;  %v3277_v23 = vadd.f32 %v961_v9, %v957_v46  ;;  %v3279_v24 = vadd.f32 %v961_v9, %v950_v37  ;;  %v3290_v28 = vadd.f32 %v961_v9, %v951_v10  ;;  %2475 = vmatprep.subr.mxu1 %v1446_v26  ;;  %v1441_v37 = vld [vmem:[%s3842_s2 + $0xb8] sm:$0xff]  ;;  %v1423_v26 = vld [vmem:[%s3842_s2 + $0x28] sm:$0xff] }
 0x2b1   : > { %v980_v33 = vmin.f32 %v3263_v14, 0.0  ;;  %v981_v27 = vmin.f32 %v3265_v15, 0.0  ;;  %v982_v30 = vmin.f32 %v3267_v20, 0.0  ;;  %v983_v31 = vmin.f32 %v3269_v21, 0.0  ;;  %2476 = vmatpush3.msra.mxu1 %v1430_v29  ;;  %1160 = vst.msk [vmem:[#allocation3] sm:$0xff] %vm1159_vm14, %v1136_v59  ;;  %v1425_v41 = vld [vmem:[%s3842_s2 + $0x38] sm:$0xff] }
 0x2b2   : > { %v984_v32 = vmin.f32 %v3275_v22, 0.0  ;;  %v985_v36 = vmin.f32 %v3277_v23, 0.0  ;;  %v978_v42 = vmin.f32 %v3279_v24, 0.0  ;;  %2477 = vmatprep.subr.mxu1 %v1445_v38  ;;  %v979_v51 = vmin.f32 %v3290_v28, 0.0  ;;  %v1421_v59 = vld [vmem:[%s3842_s2 + $0x18] sm:$0xff] }
 0x2b3   : > { %v990_v39 = vmul.f32 1.442695, %v980_v33  ;;  %v992_v40 = vmul.f32 1.442695, %v981_v27  ;;  %v994_v44 = vmul.f32 1.442695, %v982_v30  ;;  %2478 = vmatpush3.msra.mxu1 %v1429_v43 }
 0x2b4   : > { %v996_v45 = vmul.f32 1.442695, %v983_v31  ;;  %v998_v48 = vmul.f32 1.442695, %v984_v32  ;;  %v1000_v50 = vmul.f32 1.442695, %v985_v36  ;;  %2479 = vmatprep.subr.mxu1 %v1444_v47 }
 0x2b5   : > { %2646 = vpow2.f32 %v990_v39  ;;  %v986_v54 = vmul.f32 1.442695, %v978_v42  ;;  %v988_v56 = vmul.f32 1.442695, %v979_v51  ;;  %2480 = vmatpush3.msra.mxu1 %v1428_v49  ;;  %vm972_vm15 = vcmp.gt.f32.partialorder %v3263_v14, 0.0 }
 0x2b6   : > { %2648 = vpow2.f32 %v992_v40  ;;  %2481 = vmatprep.subr.mxu1 %v1443_v52  ;;  %vm973_vm1 = vcmp.gt.f32.partialorder %v3265_v15, 0.0  ;;  %vm974_vm2 = vcmp.gt.f32.partialorder %v3267_v20, 0.0  ;;  %vm975_vm3 = vcmp.gt.f32.partialorder %v3269_v21, 0.0 }
 0x2b7   : > { %2650 = vpow2.f32 %v994_v44  ;;  %2482 = vmatpush3.msra.mxu1 %v1427_v55  ;;  %vm976_vm4 = vcmp.gt.f32.partialorder %v3275_v22, 0.0  ;;  %vm977_vm5 = vcmp.gt.f32.partialorder %v3277_v23, 0.0  ;;  %vm970_vm6 = vcmp.gt.f32.partialorder %v3279_v24, 0.0 }
 0x2b8   : > { %2652 = vpow2.f32 %v996_v45  ;;  %2483 = vmatprep.subr.mxu1 %v1442_v57  ;;  %vm971_vm7 = vcmp.gt.f32.partialorder %v3290_v28, 0.0  ;;  %v1422_v57 = vld [vmem:[%s3842_s2 + $0x20] sm:$0xff] }
 0x2b9   : > { %2654 = vpow2.f32 %v998_v48  ;;  %2484 = vmatpush3.msra.mxu1 %v1426_v35 }
 0x2ba   : > { %2656 = vpow2.f32 %v1000_v50  ;;  %2485 = vmatprep.subr.mxu1 %v1441_v37 }
 0x2bb   : > { %2658 = vpow2.f32 %v986_v54  ;;  %2486 = vmatpush3.msra.mxu1 %v1425_v41  ;;  %v1337_v41 = vld [vmem:[#allocation4 + $0x91] sm:$0xff] }
 0x2bc   : > { %2660 = vpow2.f32 %v988_v56 }
 0x2c2   : > { %v2647_v60 = vpop.eup %2646 }
 0x2c3   : > { %v2649_v61 = vpop.eup %2648  ;;  %v2419_v63 = vadd.f32 -1.0, %v2647_v60  ;;  %v1436_v60 = vld [vmem:[%s3842_s2 + $0x90] sm:$0xff] }
 0x2c4   : > { %v2651_v0 = vpop.eup %2650  ;;  %v2420_v2 = vadd.f32 -1.0, %v2649_v61  ;;  %v1420_v61 = vld [vmem:[%s3842_s2 + $0x10] sm:$0xff] }
 0x2c5   : > { %v2653_v3 = vpop.eup %2652  ;;  %v2421_v4 = vadd.f32 -1.0, %v2651_v0  ;;  %v1012_v5 = vsel %vm972_vm15, %v3263_v14, %v2419_v63  ;;  %v1435_v63 = vld [vmem:[%s3842_s2 + $0x88] sm:$0xff] }
 0x2c6   : > { %v2655_v6 = vpop.eup %2654  ;;  %v2422_v7 = vadd.f32 -1.0, %v2653_v3  ;;  %v1013_v8 = vsel %vm973_vm1, %v3265_v15, %v2420_v2  ;;  %1048 = vst.msk [vmem:[#allocation4 + $0x31] sm:$0xff] %vm807_vm8, %v1012_v5  ;;  %v1440_v15 = vld [vmem:[%s3842_s2 + $0xb0] sm:$0xff]  ;;  %v1419_v2 = vld [vmem:[%s3842_s2 + $0x8] sm:$0xff] }
 0x2c7   : > { %v2657_v9 = vpop.eup %2656  ;;  %v2423_v11 = vadd.f32 -1.0, %v2655_v6  ;;  %v1014_v12 = vsel %vm974_vm2, %v3267_v20, %v2421_v4  ;;  %1049 = vst.msk [vmem:[#allocation4 + $0x41] sm:$0xff] %vm807_vm8, %v1013_v8  ;;  %2487 = vmatprep.subr.mxu1 %v1440_v15  ;;  %v1434_v4 = vld [vmem:[%s3842_s2 + $0x80] sm:$0xff] }
 0x2c8   : > { %v2659_v46 = vpop.eup %2658  ;;  %v2424_v13 = vadd.f32 -1.0, %v2657_v9  ;;  %v1015_v14 = vsel %vm975_vm3, %v3269_v21, %v2422_v7  ;;  %1050 = vst.msk [vmem:[#allocation4 + $0x51] sm:$0xff] %vm807_vm8, %v1014_v12  ;;  %v1418_v6 = vld [vmem:[%s3842_s2] sm:$0xff]  ;;  %v1385_v12 = vld [vmem:[#allocation4 + $0x92] sm:$0xff] }
 0x2c9   : > { %v2661_v20 = vpop.eup %2660  ;;  %v1016_v34 = vsel %vm976_vm4, %v3275_v22, %v2423_v11  ;;  %1051 = vst.msk [vmem:[#allocation4 + $0x61] sm:$0xff] %vm807_vm8, %v1015_v14  ;;  %v2417_v53 = vadd.f32 -1.0, %v2659_v46  ;;  %v1424_v22 = vld [vmem:[%s3842_s2 + $0x30] sm:$0xff]  ;;  %1393 = vst.msk [vmem:[#allocation3 + $0xb8] sm:$0xff] %vm807_vm8, %v1385_v12  ;;  %v3568_v46 = vpop.permute.xlu0 %1312 }
 0x2ca   : > { %v1017_v10 = vsel %vm977_vm5, %v3277_v23, %v2424_v13  ;;  %1052 = vst.msk [vmem:[#allocation4 + $0x71] sm:$0xff] %vm807_vm8, %v1016_v34  ;;  %v2418_v21 = vadd.f32 -1.0, %v2661_v20  ;;  %v1439_v23 = vld [vmem:[%s3842_s2 + $0xa8] sm:$0xff]  ;;  %2488 = vmatpush3.msra.mxu1 %v1424_v22 }
 0x2cb   : > { %1053 = vst.msk [vmem:[#allocation4 + $0x81] sm:$0xff] %vm807_vm8, %v1017_v10  ;;  %v1010_v25 = vsel %vm970_vm6, %v3279_v24, %v2417_v53  ;;  %v1438_v24 = vld [vmem:[%s3842_s2 + $0xa0] sm:$0xff]  ;;  %2489 = vmatprep.subr.mxu1 %v1439_v23 }
 0x2cc   : > { %1046 = vst.msk [vmem:[#allocation4 + $0x11] sm:$0xff] %vm807_vm8, %v1010_v25  ;;  %v1011_v33 = vsel %vm971_vm7, %v3290_v28, %v2418_v21  ;;  %2490 = vmatpush3.msra.mxu1 %v1423_v26 }
 0x2cd   : > { %1047 = vst.msk [vmem:[#allocation4 + $0x21] sm:$0xff] %vm807_vm8, %v1011_v33  ;;  %v3372_v27 = vld [vmem:[#allocation4 + $0x32] sm:$0xff]  ;;  %2491 = vmatprep.subr.mxu1 %v1438_v24 }
 0x2ce   : > { %v3374_v29 = vld [vmem:[#allocation4 + $0x30] sm:$0xff]  ;;  %1387 = vst.msk [vmem:[#allocation3 + $0x28] sm:$0xff] %vm807_vm8, %v3372_v27  ;;  %v3380_v31 = vld [vmem:[#allocation4 + $0x42] sm:$0xff]  ;;  %2492 = vmatpush3.msra.mxu1 %v1422_v57 }
 0x2cf   : > { %v3376_v30 = vld [vmem:[#allocation4 + $0x31] sm:$0xff]  ;;  %v3382_v28 = vld [vmem:[#allocation4 + $0x40] sm:$0xff]  ;;  %1065 = vst.msk [vmem:[#allocation3 + $0x48] sm:$0xff] %vm807_vm8, %v3374_v29  ;;  %1388 = vst.msk [vmem:[#allocation3 + $0x40] sm:$0xff] %vm807_vm8, %v3380_v31  ;;  %2493 = vmatprep.subr.mxu1 %v1437_v58 }
 0x2d0   : > { %v3384_v32 = vld [vmem:[#allocation4 + $0x41] sm:$0xff]  ;;  %1227 = vst.msk [vmem:[#allocation3 + $0x38] sm:$0xff] %vm807_vm8, %v3376_v30  ;;  %v3392_v36 = vld [vmem:[#allocation4 + $0x52] sm:$0xff]  ;;  %1066 = vst.msk [vmem:[#allocation3 + $0x60] sm:$0xff] %vm807_vm8, %v3382_v28  ;;  %2494 = vmatpush3.msra.mxu1 %v1421_v59 }
 0x2d1   : > { %v3394_v38 = vld [vmem:[#allocation4 + $0x50] sm:$0xff]  ;;  %1228 = vst.msk [vmem:[#allocation3 + $0x50] sm:$0xff] %vm807_vm8, %v3384_v32  ;;  %1389 = vst.msk [vmem:[#allocation3 + $0x58] sm:$0xff] %vm807_vm8, %v3392_v36  ;;  %v3404_v40 = vld [vmem:[#allocation4 + $0x62] sm:$0xff]  ;;  %2495 = vmatprep.subr.mxu1 %v1436_v60 }
 0x2d2   : > { %v3396_v39 = vld [vmem:[#allocation4 + $0x51] sm:$0xff]  ;;  %v3406_v42 = vld [vmem:[#allocation4 + $0x60] sm:$0xff]  ;;  %1067 = vst.msk [vmem:[#allocation3 + $0x78] sm:$0xff] %vm807_vm8, %v3394_v38  ;;  %1390 = vst.msk [vmem:[#allocation3 + $0x70] sm:$0xff] %vm807_vm8, %v3404_v40  ;;  %2496 = vmatpush3.msra.mxu1 %v1420_v61 }
 0x2d3   : > { %v3408_v43 = vld [vmem:[#allocation4 + $0x61] sm:$0xff]  ;;  %1229 = vst.msk [vmem:[#allocation3 + $0x68] sm:$0xff] %vm807_vm8, %v3396_v39  ;;  %v3416_v44 = vld [vmem:[#allocation4 + $0x72] sm:$0xff]  ;;  %1068 = vst.msk [vmem:[#allocation3 + $0x90] sm:$0xff] %vm807_vm8, %v3406_v42  ;;  %2497 = vmatprep.subr.mxu1 %v1435_v63 }
 0x2d4   : > { %v3418_v45 = vld [vmem:[#allocation4 + $0x70] sm:$0xff]  ;;  %1230 = vst.msk [vmem:[#allocation3 + $0x80] sm:$0xff] %vm807_vm8, %v3408_v43  ;;  %1391 = vst.msk [vmem:[#allocation3 + $0x88] sm:$0xff] %vm807_vm8, %v3416_v44  ;;  %v3428_v48 = vld [vmem:[#allocation4 + $0x82] sm:$0xff]  ;;  %2498 = vmatpush3.msra.mxu1 %v1419_v2 }
 0x2d5   : > { %v3420_v47 = vld [vmem:[#allocation4 + $0x71] sm:$0xff]  ;;  %v3430_v49 = vld [vmem:[#allocation4 + $0x81] sm:$0xff]  ;;  %1069 = vst.msk [vmem:[#allocation3 + $0xa8] sm:$0xff] %vm807_vm8, %v3418_v45  ;;  %1392 = vst.msk [vmem:[#allocation3 + $0xa0] sm:$0xff] %vm807_vm8, %v3428_v48  ;;  %2499 = vmatprep.subr.mxu1 %v1434_v4 }
 0x2d6   : > { %1231 = vst.msk [vmem:[#allocation3 + $0x98] sm:$0xff] %vm807_vm8, %v3420_v47  ;;  %v1233_v50 = vld [vmem:[#allocation4 + $0x12] sm:$0xff]  ;;  %1232 = vst.msk [vmem:[#allocation3 + $0xb0] sm:$0xff] %vm807_vm8, %v3430_v49  ;;  %v1282_v54 = vld [vmem:[#allocation4 + $0x20] sm:$0xff]  ;;  %2500 = vmatpush3.msra.mxu1 %v1418_v6 }
 0x2d7   : > { %v1168_v51 = vld [vmem:[#allocation4 + $0x10] sm:$0xff]  ;;  %1249 = vrot.lane.b32.xlu0 %v1233_v50, %s2718_s18  ;;  %v1378_v55 = vld [vmem:[#allocation4 + $0x22] sm:$0xff]  ;;  %1064 = vst.msk [vmem:[#allocation3 + $0x30] sm:$0xff] %vm807_vm8, %v1282_v54  ;;  %2588 = vmatprep.subr.mxu1 %v2714_v1  ;;  %v1417_v37 = vld [vmem:[#allocation3 + $0xb8] sm:$0xff] }
 0x2d8   : > { %v1071_v52 = vld [vmem:[#allocation4 + $0x11] sm:$0xff]  ;;  %1184 = vrot.lane.b32.xlu1 %v1168_v51, %s2720_s28  ;;  %v1330_v56 = vld [vmem:[#allocation4 + $0x21] sm:$0xff]  ;;  %1063 = vst.msk [vmem:[#allocation3 + $0x18] sm:$0xff] %vm807_vm8, %v1168_v51  ;;  %1386 = vst.msk [vmem:[#allocation3 + $0x10] sm:$0xff] %vm807_vm8, %v1378_v55 }
 0x2d9   : > { %1225 = vst.msk [vmem:[#allocation3 + $0x8] sm:$0xff] %vm807_vm8, %v1071_v52  ;;  %1226 = vst.msk [vmem:[#allocation3 + $0x20] sm:$0xff] %vm807_vm8, %v1330_v56  ;;  %v1399_v0 = vld [vmem:[#allocation3 + $0x28] sm:$0xff]  ;;  %v1402_v5 = vld [vmem:[#allocation3 + $0x40] sm:$0xff] }
 0x2da   : > { %v1405_v7 = vld [vmem:[#allocation3 + $0x58] sm:$0xff]  ;;  %v1408_v8 = vld [vmem:[#allocation3 + $0x70] sm:$0xff]  ;;  %v1288_v35 = vld [vmem:[#allocation4 + $0x80] sm:$0xff] }
 0x2db   : > { %1298 = vrot.lane.b32.xlu0 %v1282_v54, %s2717_s17  ;;  %v1411_v9 = vld [vmem:[#allocation3 + $0x88] sm:$0xff] }
 0x2dc   : > { %1088 = vrot.lane.b32.xlu1 %v1071_v52, %s2718_s18  ;;  %v1414_v11 = vld [vmem:[#allocation3 + $0xa0] sm:$0xff] }
 0x2df   : > { %v1396_v3 = vld [vmem:[#allocation3 + $0x10] sm:$0xff]  ;;  %1346 = vrot.lane.b32.xlu0 %v1330_v56, %s2720_s28 }
 0x2e0   : > { %1137 = vrot.lane.b32.xlu1 %v1233_v50, %s2717_s17  ;;  %2576 = vmatprep.mubr.msk.f32.mxu0 %vm807_vm8, %v1396_v3 }
 0x2e1   : > { %2577 = vmatmul.mubr.msk.f32.vlgmr.msra.gmra.mxu0 %vm807_vm8, %v1399_v0 }
 0x2e2   : > { %2579 = vmatprep.mubr.msk.f32.mxu0 %vm807_vm8, %v1402_v5  ;;  %2616 = vmatpush3.msra.mxu0 %v3089_v16 }
 0x2e3   : > { %1251 = vrot.lane.b32.xlu0 %v1378_v55, %s2718_s18  ;;  %2617 = vmatprep.subr.mxu0 %v2714_v1 }
 0x2e4   : > { %1186 = vrot.lane.b32.xlu1 %v1282_v54, %s2720_s28  ;;  %2618 = vmatpush3.msra.mxu0 %v3094_v17 }
 0x2e5   : > { %2580 = vmatmul.mubr.msk.f32.gmra.mxu0 %vm807_vm8, %v1405_v7  ;;  %2619 = vmatprep.subr.mxu0 %v2714_v1 }
 0x2e6   : > { %2582 = vmatprep.mubr.msk.f32.mxu0 %vm807_vm8, %v1408_v8  ;;  %2620 = vmatpush3.msra.mxu0 %v3103_v18 }
 0x2e7   : > { %1300 = vrot.lane.b32.xlu0 %v3374_v29, %s2717_s17  ;;  %2621 = vmatprep.subr.mxu0 %v2714_v1 }
 0x2e8   : > { %1090 = vrot.lane.b32.xlu1 %v1330_v56, %s2718_s18  ;;  %2622 = vmatpush3.msra.mxu0 %v3110_v19 }
 0x2e9   : > { %2583 = vmatmul.mubr.msk.f32.gmra.mxu0 %vm807_vm8, %v1411_v9 }
 0x2ea   : > { %2585 = vmatprep.mubr.msk.f32.mxu0 %vm807_vm8, %v1414_v11 }
 0x2eb   : > { %1348 = vrot.lane.b32.xlu0 %v3376_v30, %s2720_s28 }
 0x2ec   : > { %1139 = vrot.lane.b32.xlu1 %v1378_v55, %s2717_s17 }
 0x2ed   : > { %2586 = vmatmul.mubr.msk.f32.gmra.mxu0 %vm807_vm8, %v1417_v37 }
 0x2ee   : > { %2623 = vmatprep.mubr.msk.f32.mxu0 %vm2722_vm9, %v2714_v1 }
 0x2ef   : > { %1253 = vrot.lane.b32.xlu0 %v3372_v27, %s2718_s18 }
 0x2f0   : > { %1188 = vrot.lane.b32.xlu1 %v3374_v29, %s2720_s28 }
 0x2f3   : > { %1302 = vrot.lane.b32.xlu0 %v3382_v28, %s2717_s17 }
 0x2f4   : > { %1092 = vrot.lane.b32.xlu1 %v3376_v30, %s2718_s18 }
 0x2f7   : > { %1350 = vrot.lane.b32.xlu0 %v3384_v32, %s2720_s28 }
 0x2f8   : > { %1141 = vrot.lane.b32.xlu1 %v3372_v27, %s2717_s17 }
 0x2fb   : > { %1255 = vrot.lane.b32.xlu0 %v3380_v31, %s2718_s18 }
 0x2fc   : > { %1190 = vrot.lane.b32.xlu1 %v3382_v28, %s2720_s28 }
 0x2ff   : > { %1304 = vrot.lane.b32.xlu0 %v3394_v38, %s2717_s17 }
 0x300   : > { %1094 = vrot.lane.b32.xlu1 %v3384_v32, %s2718_s18 }
 0x303   : > { %1352 = vrot.lane.b32.xlu0 %v3396_v39, %s2720_s28 }
 0x304   : > { %1143 = vrot.lane.b32.xlu1 %v3380_v31, %s2717_s17 }
 0x307   : > { %1257 = vrot.lane.b32.xlu0 %v3392_v36, %s2718_s18 }
 0x308   : > { %1192 = vrot.lane.b32.xlu1 %v3394_v38, %s2720_s28 }
 0x30b   : > { %1306 = vrot.lane.b32.xlu0 %v3406_v42, %s2717_s17 }
 0x30c   : > { %1096 = vrot.lane.b32.xlu1 %v3396_v39, %s2718_s18 }
 0x30f   : > { %1354 = vrot.lane.b32.xlu0 %v3408_v43, %s2720_s28 }
 0x310   : > { %1145 = vrot.lane.b32.xlu1 %v3392_v36, %s2717_s17 }
 0x313   : > { %1259 = vrot.lane.b32.xlu0 %v3404_v40, %s2718_s18 }
 0x314   : > { %1194 = vrot.lane.b32.xlu1 %v3406_v42, %s2720_s28 }
 0x317   : > { %1308 = vrot.lane.b32.xlu0 %v3418_v45, %s2717_s17 }
 0x318   : > { %1098 = vrot.lane.b32.xlu1 %v3408_v43, %s2718_s18 }
 0x31b   : > { %1356 = vrot.lane.b32.xlu0 %v3420_v47, %s2720_s28 }
 0x31c   : > { %1147 = vrot.lane.b32.xlu1 %v3404_v40, %s2717_s17 }
 0x31f   : > { %1261 = vrot.lane.b32.xlu0 %v3416_v44, %s2718_s18 }
 0x320   : > { %1196 = vrot.lane.b32.xlu1 %v3418_v45, %s2720_s28 }
 0x323   : > { %1310 = vrot.lane.b32.xlu0 %v1288_v35, %s2717_s17 }
 0x324   : > { %1100 = vrot.lane.b32.xlu1 %v3420_v47, %s2718_s18 }
 0x327   : > { %1358 = vrot.lane.b32.xlu0 %v3430_v49, %s2720_s28 }
 0x328   : > { %1149 = vrot.lane.b32.xlu1 %v3416_v44, %s2717_s17 }
 0x32b   : > { %1263 = vrot.lane.b32.xlu0 %v3428_v48, %s2718_s18 }
 0x32c   : > { %1198 = vrot.lane.b32.xlu1 %v1288_v35, %s2720_s28 }
 0x32f   : > { %1360 = vrot.lane.b32.xlu0 %v1337_v41, %s2720_s28 }
 0x349   : > { %v1250_v13 = vpop.permute.xlu0 %1249 }
 0x34a   : > { %v1185_v14 = vpop.permute.xlu1 %1184  ;;  %1273 = vst.msk [vmem:[#allocation3 + $0x8] sm:$0xff] %vm1110_vm13, %v1250_v13  ;;  %v3629_v13 = vld [vmem:[%s3843_s3 + $0x8] sm:$0xff] }
 0x34b   : > { %1209 = vst.msk [vmem:[#allocation3] sm:$0xff] %vm1208_vm11, %v1185_v14 }
 0x34d   : > { %v1299_v15 = vpop.permute.xlu0 %1298 }
 0x34e   : > { %v1089_v20 = vpop.permute.xlu1 %1088  ;;  %1322 = vst.msk [vmem:[#allocation3 + $0x8] sm:$0xff] %vm1159_vm14, %v1299_v15 }
 0x34f   : > { %1112 = vst.msk [vmem:[#allocation3 + $0x18] sm:$0xff] %vm1110_vm13, %v1089_v20 }
 0x351   : > { %v1347_v34 = vpop.permute.xlu0 %1346 }
 0x352   : > { %v1138_v53 = vpop.permute.xlu1 %1137  ;;  %1370 = vst.msk [vmem:[#allocation3 + $0x8] sm:$0xff] %vm1208_vm11, %v1347_v34  ;;  %v1394_v26 = vld [vmem:[#allocation3] sm:$0xff] }
 0x353   : > { %1161 = vst.msk [vmem:[#allocation3 + $0x18] sm:$0xff] %vm1159_vm14, %v1138_v53 }
 0x355   : > { %v1252_v10 = vpop.permute.xlu0 %1251 }
 0x356   : > { %v1187_v21 = vpop.permute.xlu1 %1186  ;;  %1274 = vst.msk [vmem:[#allocation3 + $0x20] sm:$0xff] %vm1110_vm13, %v1252_v10 }
 0x357   : > { %1210 = vst.msk [vmem:[#allocation3 + $0x18] sm:$0xff] %vm1208_vm11, %v1187_v21 }
 0x359   : > { %v1301_v25 = vpop.permute.xlu0 %1300  ;;  %v1395_v23 = vld [vmem:[#allocation3 + $0x8] sm:$0xff] }
 0x35a   : > { %v1091_v22 = vpop.permute.xlu1 %1090  ;;  %1323 = vst.msk [vmem:[#allocation3 + $0x20] sm:$0xff] %vm1159_vm14, %v1301_v25  ;;  %1547 = vmatprep.mubr.f32.mxu1 %v1395_v23 }
 0x35b   : > { %1113 = vst.msk [vmem:[#allocation3 + $0x30] sm:$0xff] %vm1110_vm13, %v1091_v22  ;;  %1548 = vmatmul.mubr.f32.vlgmr.msra.gmra.mxu1 %v1394_v26 }
 0x35c   : > { %2589 = vmatpush3.msra.mxu1 %v3089_v16 }
 0x35d   : > { %v1349_v33 = vpop.permute.xlu0 %1348  ;;  %2590 = vmatprep.subr.mxu1 %v2714_v1 }
 0x35e   : > { %v1140_v24 = vpop.permute.xlu1 %1139  ;;  %1371 = vst.msk [vmem:[#allocation3 + $0x20] sm:$0xff] %vm1208_vm11, %v1349_v33  ;;  %2591 = vmatpush3.msra.mxu1 %v3094_v17  ;;  %v1397_v17 = vld [vmem:[#allocation3 + $0x18] sm:$0xff] }
 0x35f   : > { %1162 = vst.msk [vmem:[#allocation3 + $0x30] sm:$0xff] %vm1159_vm14, %v1140_v24  ;;  %2592 = vmatprep.subr.mxu1 %v2714_v1 }
 0x360   : > { %2593 = vmatpush3.msra.mxu1 %v3103_v18 }
 0x361   : > { %v1254_v27 = vpop.permute.xlu0 %1253  ;;  %2594 = vmatprep.subr.mxu1 %v2714_v1 }
 0x362   : > { %v1189_v29 = vpop.permute.xlu1 %1188  ;;  %1275 = vst.msk [vmem:[#allocation3 + $0x38] sm:$0xff] %vm1110_vm13, %v1254_v27  ;;  %2595 = vmatpush3.msra.mxu1 %v3110_v19 }
 0x363   : > { %1211 = vst.msk [vmem:[#allocation3 + $0x30] sm:$0xff] %vm1208_vm11, %v1189_v29  ;;  %2599 = vmatprep.subr.mxu1 %v3629_v13 }
 0x365   : > { %v1303_v16 = vpop.permute.xlu0 %1302  ;;  %v1398_v31 = vld [vmem:[#allocation3 + $0x20] sm:$0xff] }
 0x366   : > { %v1093_v30 = vpop.permute.xlu1 %1092  ;;  %1324 = vst.msk [vmem:[#allocation3 + $0x38] sm:$0xff] %vm1159_vm14, %v1303_v16  ;;  %1552 = vmatprep.mubr.f32.mxu1 %v1398_v31  ;;  %v2425_v16 = vld [vmem:[%s3845_s5 + $0x3] ss:$0 sm:$0xff] }
 0x367   : > { %1114 = vst.msk [vmem:[#allocation3 + $0x48] sm:$0xff] %vm1110_vm13, %v1093_v30  ;;  %1553 = vmatmul.mubr.f32.gmra.mxu1 %v1397_v17 }
 0x369   : > { %v1351_v18 = vpop.permute.xlu0 %1350 }
 0x36a   : > { %v1142_v28 = vpop.permute.xlu1 %1141  ;;  %1372 = vst.msk [vmem:[#allocation3 + $0x38] sm:$0xff] %vm1208_vm11, %v1351_v18  ;;  %v1400_v40 = vld [vmem:[#allocation3 + $0x30] sm:$0xff] }
 0x36b   : > { %1163 = vst.msk [vmem:[#allocation3 + $0x48] sm:$0xff] %vm1159_vm14, %v1142_v28 }
 0x36d   : > { %v1256_v32 = vpop.permute.xlu0 %1255 }
 0x36e   : > { %v1191_v36 = vpop.permute.xlu1 %1190  ;;  %1276 = vst.msk [vmem:[#allocation3 + $0x50] sm:$0xff] %vm1110_vm13, %v1256_v32 }
 0x36f   : > { %1212 = vst.msk [vmem:[#allocation3 + $0x48] sm:$0xff] %vm1208_vm11, %v1191_v36 }
 0x371   : > { %v1305_v19 = vpop.permute.xlu0 %1304  ;;  %v1401_v39 = vld [vmem:[#allocation3 + $0x38] sm:$0xff] }
 0x372   : > { %v1095_v38 = vpop.permute.xlu1 %1094  ;;  %1325 = vst.msk [vmem:[#allocation3 + $0x50] sm:$0xff] %vm1159_vm14, %v1305_v19  ;;  %1557 = vmatprep.mubr.f32.mxu1 %v1401_v39 }
 0x373   : > { %1115 = vst.msk [vmem:[#allocation3 + $0x60] sm:$0xff] %vm1110_vm13, %v1095_v38  ;;  %1558 = vmatmul.mubr.f32.gmra.mxu1 %v1400_v40 }
 0x375   : > { %v1353_v42 = vpop.permute.xlu0 %1352 }
 0x376   : > { %v1144_v43 = vpop.permute.xlu1 %1143  ;;  %1373 = vst.msk [vmem:[#allocation3 + $0x50] sm:$0xff] %vm1208_vm11, %v1353_v42  ;;  %v1403_v50 = vld [vmem:[#allocation3 + $0x48] sm:$0xff] }
 0x377   : > { %1164 = vst.msk [vmem:[#allocation3 + $0x60] sm:$0xff] %vm1159_vm14, %v1144_v43 }
 0x379   : > { %v1258_v44 = vpop.permute.xlu0 %1257 }
 0x37a   : > { %v1193_v45 = vpop.permute.xlu1 %1192  ;;  %1277 = vst.msk [vmem:[#allocation3 + $0x68] sm:$0xff] %vm1110_vm13, %v1258_v44 }
 0x37b   : > { %1213 = vst.msk [vmem:[#allocation3 + $0x60] sm:$0xff] %vm1208_vm11, %v1193_v45 }
 0x37d   : > { %v1307_v47 = vpop.permute.xlu0 %1306  ;;  %v1404_v49 = vld [vmem:[#allocation3 + $0x50] sm:$0xff] }
 0x37e   : > { %v1097_v48 = vpop.permute.xlu1 %1096  ;;  %1326 = vst.msk [vmem:[#allocation3 + $0x68] sm:$0xff] %vm1159_vm14, %v1307_v47  ;;  %1562 = vmatprep.mubr.f32.mxu1 %v1404_v49 }
 0x37f   : > { %1116 = vst.msk [vmem:[#allocation3 + $0x78] sm:$0xff] %vm1110_vm13, %v1097_v48  ;;  %1563 = vmatmul.mubr.f32.gmra.mxu1 %v1403_v50 }
 0x381   : > { %v1355_v51 = vpop.permute.xlu0 %1354 }
 0x382   : > { %v1146_v52 = vpop.permute.xlu1 %1145  ;;  %1374 = vst.msk [vmem:[#allocation3 + $0x68] sm:$0xff] %vm1208_vm11, %v1355_v51  ;;  %v1406_v59 = vld [vmem:[#allocation3 + $0x60] sm:$0xff] }
 0x383   : > { %1165 = vst.msk [vmem:[#allocation3 + $0x78] sm:$0xff] %vm1159_vm14, %v1146_v52 }
 0x385   : > { %v1260_v54 = vpop.permute.xlu0 %1259 }
 0x386   : > { %v1195_v55 = vpop.permute.xlu1 %1194  ;;  %1278 = vst.msk [vmem:[#allocation3 + $0x80] sm:$0xff] %vm1110_vm13, %v1260_v54 }
 0x387   : > { %1214 = vst.msk [vmem:[#allocation3 + $0x78] sm:$0xff] %vm1208_vm11, %v1195_v55 }
 0x389   : > { %v1309_v56 = vpop.permute.xlu0 %1308  ;;  %v1407_v58 = vld [vmem:[#allocation3 + $0x68] sm:$0xff] }
 0x38a   : > { %v1099_v57 = vpop.permute.xlu1 %1098  ;;  %1327 = vst.msk [vmem:[#allocation3 + $0x80] sm:$0xff] %vm1159_vm14, %v1309_v56  ;;  %1567 = vmatprep.mubr.f32.mxu1 %v1407_v58 }
 0x38b   : > { %1117 = vst.msk [vmem:[#allocation3 + $0x90] sm:$0xff] %vm1110_vm13, %v1099_v57  ;;  %1568 = vmatmul.mubr.f32.gmra.mxu1 %v1406_v59 }
 0x38d   : > { %v1357_v60 = vpop.permute.xlu0 %1356 }
 0x38e   : > { %v1148_v61 = vpop.permute.xlu1 %1147  ;;  %1375 = vst.msk [vmem:[#allocation3 + $0x80] sm:$0xff] %vm1208_vm11, %v1357_v60  ;;  %v1409_v5 = vld [vmem:[#allocation3 + $0x78] sm:$0xff] }
 0x38f   : > { %1166 = vst.msk [vmem:[#allocation3 + $0x90] sm:$0xff] %vm1159_vm14, %v1148_v61 }
 0x391   : > { %v1262_v63 = vpop.permute.xlu0 %1261 }
 0x392   : > { %v1197_v0 = vpop.permute.xlu1 %1196  ;;  %1279 = vst.msk [vmem:[#allocation3 + $0x98] sm:$0xff] %vm1110_vm13, %v1262_v63 }
 0x393   : > { %1215 = vst.msk [vmem:[#allocation3 + $0x90] sm:$0xff] %vm1208_vm11, %v1197_v0 }
 0x395   : > { %v1311_v2 = vpop.permute.xlu0 %1310  ;;  %v1410_v4 = vld [vmem:[#allocation3 + $0x80] sm:$0xff] }
 0x396   : > { %v1101_v3 = vpop.permute.xlu1 %1100  ;;  %1328 = vst.msk [vmem:[#allocation3 + $0x98] sm:$0xff] %vm1159_vm14, %v1311_v2  ;;  %1572 = vmatprep.mubr.f32.mxu1 %v1410_v4 }
 0x397   : > { %1118 = vst.msk [vmem:[#allocation3 + $0xa8] sm:$0xff] %vm1110_vm13, %v1101_v3  ;;  %1573 = vmatmul.mubr.f32.gmra.mxu1 %v1409_v5 }
 0x399   : > { %v1359_v6 = vpop.permute.xlu0 %1358 }
 0x39a   : > { %v1150_v7 = vpop.permute.xlu1 %1149  ;;  %1376 = vst.msk [vmem:[#allocation3 + $0x98] sm:$0xff] %vm1208_vm11, %v1359_v6  ;;  %v1412_v35 = vld [vmem:[#allocation3 + $0x90] sm:$0xff] }
 0x39b   : > { %1167 = vst.msk [vmem:[#allocation3 + $0xa8] sm:$0xff] %vm1159_vm14, %v1150_v7 }
 0x39d   : > { %v1264_v8 = vpop.permute.xlu0 %1263 }
 0x39e   : > { %v1199_v9 = vpop.permute.xlu1 %1198  ;;  %1280 = vst.msk [vmem:[#allocation3 + $0xb0] sm:$0xff] %vm1110_vm13, %v1264_v8 }
 0x39f   : > { %1216 = vst.msk [vmem:[#allocation3 + $0xa8] sm:$0xff] %vm1208_vm11, %v1199_v9 }
 0x3a0   : > { %1329 = vst.msk [vmem:[#allocation3 + $0xb0] sm:$0xff] %vm1159_vm14, %v3568_v46 }
 0x3a1   : > { %v1361_v11 = vpop.permute.xlu0 %1360  ;;  %v1413_v12 = vld [vmem:[#allocation3 + $0x98] sm:$0xff]  ;;  %v2578_v10 = vpop.f32.mrf.mxu0 }
 0x3a2   : > { %1377 = vst.msk [vmem:[#allocation3 + $0xb0] sm:$0xff] %vm1208_vm11, %v1361_v11  ;;  %1577 = vmatprep.mubr.f32.mxu1 %v1413_v12 }
 0x3a3   : > { %1578 = vmatmul.mubr.f32.gmra.mxu1 %v1412_v35  ;;  %v1654_v25 = vpop.f32.mrf.mxu0 }
 0x3a5   : > { %v2581_v26 = vpop.f32.mrf.mxu0 }
 0x3a6   : > { %v1415_v41 = vld [vmem:[#allocation3 + $0xa8] sm:$0xff] }
 0x3a7   : > { %v1664_v24 = vpop.f32.mrf.mxu0 }
 0x3a9   : > { %v1416_v37 = vld [vmem:[#allocation3 + $0xb0] sm:$0xff]  ;;  %v2584_v18 = vpop.f32.mrf.mxu0 }
 0x3aa   : > { %1582 = vmatprep.mubr.f32.mxu1 %v1416_v37 }
 0x3ab   : > { %1583 = vmatmul.mubr.f32.gmra.mxu1 %v1415_v41  ;;  %v1674_v42 = vpop.f32.mrf.mxu0 }
 0x3ac   : > { %2596 = vmatprep.mubr.msk.f32.mxu1 %vm2722_vm9, %v2714_v1 }
 0x3ad   : > { %v2587_v49 = vpop.f32.mrf.mxu0 }
 0x3af   : > { %v1684_v61 = vpop.f32.mrf.mxu0 }
 0x41b   : > { %v2501_v46 = vpop.f32.mrf.mxu1 }
 0x41d   : > { %v2502_v14 = vpop.f32.mrf.mxu1 }
 0x41e   : > { %v2503_v27 = vadd.f32 %v2502_v14, %v2501_v46 }
 0x420   : > { %v1550_v28 = vadd.f32 %v2503_v27, %v2425_v16 }
 0x422   : > { %v3637_v43 = vadd.f32 %v1654_v25, %v1550_v28 }
 0x424   : > { %v1716_v52 = vmul.f32 %v3637_v43, %v3637_v43  ;;  %v1695_v59 = vsel %vm807_vm8, %v3637_v43, 0.0 }
 0x426   : > { %v1724_v4 = vsel %vm807_vm8, %v1716_v52, 0.0 }
 0x427   : > { %v2504_v15 = vpop.f32.mrf.mxu1 }
 0x429   : > { %v2505_v20 = vpop.f32.mrf.mxu1 }
 0x42a   : > { %v2506_v1 = vadd.f32 %v2505_v20, %v2504_v15 }
 0x42c   : > { %v1555_v31 = vadd.f32 %v2506_v1, %v2425_v16 }
 0x42e   : > { %v3635_v38 = vadd.f32 %v2578_v10, %v1555_v31 }
 0x430   : > { %v1717_v47 = vmul.f32 %v3635_v38, %v3635_v38  ;;  %v1696_v55 = vsel %vm807_vm8, %v3635_v38, 0.0 }
 0x431   : > { %v1697_v5 = vadd.f32 %v1696_v55, %v1695_v59  ;;  %v2698_v59 = vld [vmem:[%s2785_s8 + $0x1b0] sm:$0xff] }
 0x432   : > { %v1725_v60 = vsel %vm807_vm8, %v1717_v47, 0.0 }
 0x433   : > { %v2507_v34 = vpop.f32.mrf.mxu1  ;;  %v1726_v11 = vadd.f32 %v1725_v60, %v1724_v4  ;;  %v2699_v60 = vld [vmem:[%s2785_s8 + $0x1c0] sm:$0xff] }
 0x434   : > { %v2705_v4 = vld [vmem:[%s2785_s8 + $0x220] sm:$0xff] }
 0x435   : > { %v2508_v53 = vpop.f32.mrf.mxu1 }
 0x436   : > { %v2509_v30 = vadd.f32 %v2508_v53, %v2507_v34 }
 0x438   : > { %v1560_v36 = vadd.f32 %v2509_v30, %v2425_v16 }
 0x43a   : > { %v3639_v44 = vadd.f32 %v1664_v24, %v1560_v36 }
 0x43c   : > { %v1718_v56 = vmul.f32 %v3639_v44, %v3639_v44  ;;  %v1698_v63 = vsel %vm807_vm8, %v3639_v44, 0.0 }
 0x43d   : > { %v1699_v12 = vadd.f32 %v1698_v63, %v1697_v5  ;;  %v2701_v63 = vld [vmem:[%s2785_s8 + $0x1e0] sm:$0xff] }
 0x43e   : > { %v1727_v6 = vsel %vm807_vm8, %v1718_v56, 0.0 }
 0x43f   : > { %v2510_v21 = vpop.f32.mrf.mxu1  ;;  %v1728_v14 = vadd.f32 %v1727_v6, %v1726_v11 }
 0x441   : > { %v2511_v22 = vpop.f32.mrf.mxu1 }
 0x442   : > { %v2512_v17 = vadd.f32 %v2511_v22, %v2510_v21 }
 0x444   : > { %v1565_v39 = vadd.f32 %v2512_v17, %v2425_v16 }
 0x446   : > { %v3643_v50 = vadd.f32 %v2581_v26, %v1565_v39 }
 0x448   : > { %v1719_v0 = vmul.f32 %v3643_v50, %v3643_v50  ;;  %v1700_v7 = vsel %vm807_vm8, %v3643_v50, 0.0 }
 0x449   : > { %v1701_v15 = vadd.f32 %v1700_v7, %v1699_v12 }
 0x44a   : > { %v1729_v37 = vsel %vm807_vm8, %v1719_v0, 0.0  ;;  %v2702_v0 = vld [vmem:[%s2785_s8 + $0x1f0] sm:$0xff] }
 0x44b   : > { %v2513_v23 = vpop.f32.mrf.mxu1  ;;  %v1730_v25 = vadd.f32 %v1729_v37, %v1728_v14  ;;  %v1693_v37 = vld [vmem:[%s3845_s5 + $0x4] sm:$0x1]  ;;  %v1694_v14 = vld [vmem:[%s3845_s5 + $0x5] sm:$0x1] }
 0x44d   : > { %v2514_v33 = vpop.f32.mrf.mxu1 }
 0x44e   : > { %v2515_v19 = vadd.f32 %v2514_v33, %v2513_v23 }
 0x450   : > { %v1570_v45 = vadd.f32 %v2515_v19, %v2425_v16 }
 0x452   : > { %v3651_v57 = vadd.f32 %v1674_v42, %v1570_v45 }
 0x454   : > { %v1720_v8 = vmul.f32 %v3651_v57, %v3651_v57  ;;  %v1702_v41 = vsel %vm807_vm8, %v3651_v57, 0.0 }
 0x455   : > { %v1703_v22 = vadd.f32 %v1702_v41, %v1701_v15 }
 0x456   : > { %v1731_v34 = vsel %vm807_vm8, %v1720_v8, 0.0 }
 0x457   : > { %v2516_v29 = vpop.f32.mrf.mxu1  ;;  %v1732_v24 = vadd.f32 %v1731_v34, %v1730_v25 }
 0x459   : > { %v2517_v32 = vpop.f32.mrf.mxu1 }
 0x45a   : > { %v2518_v40 = vadd.f32 %v2517_v32, %v2516_v29 }
 0x45c   : > { %v1575_v51 = vadd.f32 %v2518_v40, %v2425_v16 }
 0x45e   : > { %v3660_v2 = vadd.f32 %v2584_v18, %v1575_v51 }
 0x460   : > { %v1721_v46 = vmul.f32 %v3660_v2, %v3660_v2  ;;  %v1704_v53 = vsel %vm807_vm8, %v3660_v2, 0.0 }
 0x461   : > { %v1705_v33 = vadd.f32 %v1704_v53, %v1703_v22 }
 0x462   : > { %v1733_v26 = vsel %vm807_vm8, %v1721_v46, 0.0 }
 0x463   : > { %v2519_v48 = vpop.f32.mrf.mxu1  ;;  %v1734_v31 = vadd.f32 %v1733_v26, %v1732_v24 }
 0x465   : > { %v2520_v54 = vpop.f32.mrf.mxu1 }
 0x466   : > { %v2521_v58 = vadd.f32 %v2520_v54, %v2519_v48 }
 0x468   : > { %v1580_v3 = vadd.f32 %v2521_v58, %v2425_v16  ;;  %v1904_v58 = vld [vmem:[%s3843_s3] sm:$0xff] }
 0x46a   : > { %v3668_v9 = vadd.f32 %v1684_v61, %v1580_v3  ;;  %v2700_v61 = vld [vmem:[%s2785_s8 + $0x1d0] sm:$0xff]  ;;  %v2703_v3 = vld [vmem:[%s2785_s8 + $0x200] sm:$0xff] }
 0x46b   : > { %v2522_v35 = vpop.f32.mrf.mxu1 }
 0x46c   : > { %v1722_v10 = vmul.f32 %v3668_v9, %v3668_v9  ;;  %v1706_v23 = vsel %vm807_vm8, %v3668_v9, 0.0 }
 0x46d   : > { %v2523_v20 = vpop.f32.mrf.mxu1  ;;  %v1707_v30 = vadd.f32 %v1706_v23, %v1705_v33 }
 0x46e   : > { %v2524_v21 = vadd.f32 %v2523_v20, %v2522_v35  ;;  %v1735_v27 = vsel %vm807_vm8, %v1722_v10, 0.0 }
 0x46f   : > { %v1736_v28 = vadd.f32 %v1735_v27, %v1734_v31 }
 0x470   : > { %v1585_v1 = vadd.f32 %v2524_v21, %v2425_v16 }
 0x472   : > { %v3684_v29 = vadd.f32 %v2587_v49, %v1585_v1 }
 0x474   : > { %v1708_v17 = vsel %vm807_vm8, %v3684_v29, 0.0  ;;  %v1723_v18 = vmul.f32 %v3684_v29, %v3684_v29 }
 0x475   : > { %v1709_v32 = vadd.f32 %v1708_v17, %v1707_v30 }
 0x476   : > { %v1737_v36 = vsel %vm807_vm8, %v1723_v18, 0.0 }
 0x477   : > { %v1710_v19 = vrot.slane %v1709_v32, 4  ;;  %v1738_v16 = vadd.f32 %v1737_v36, %v1736_v28 }
 0x479   : > { %v1711_v39 = vadd.f32 %v1710_v19, %v1709_v32  ;;  %v1739_v40 = vrot.slane %v1738_v16, 4 }
 0x47b   : > { %v1712_v42 = vrot.slane %v1711_v39, 2  ;;  %v1740_v45 = vadd.f32 %v1739_v40, %v1738_v16 }
 0x47d   : > { %v1713_v47 = vadd.f32 %v1712_v42, %v1711_v39  ;;  %v1741_v48 = vrot.slane %v1740_v45, 2 }
 0x47f   : > { %v1714_v49 = vrot.slane %v1713_v47, 1  ;;  %v1742_v51 = vadd.f32 %v1741_v48, %v1740_v45 }
 0x481   : > { %v1743_v52 = vrot.slane %v1742_v51, 1  ;;  %v1715_v54 = vadd.f32 %v1714_v49, %v1713_v47 }
 0x483   : > { %v1744_v55 = vadd.f32 %v1743_v52, %v1742_v51 }
 0x485   : > { %v1745_v56 = vsel %vm858_vm10, %v1715_v54, %v1744_v55  ;;  %v2443_v55 = vld [vmem:[%s3845_s5 + $0x6] ss:$0 sm:$0xff] }
 0x486   : > { %2597 = vmatmul.mubr.msk.f32.vlgmr.msra.gmra.mxu1 %vm807_vm8, %v1745_v56 }
 0x487   : > { %2600 = vmatpush3.msra.mxu1 %v3629_v13  ;;  %2603 = vmatprep.mubr.msk.f32.mxu1 %vm264_vm0, %v2698_v59  ;;  %v2704_v13 = vld [vmem:[%s2785_s8 + $0x210] sm:$0xff] }
 0x488   : > { %2601 = vmatprep.subr.mxu1 %v1904_v58 }
 0x489   : > { %2602 = vmatpush3.msra.mxu1 %v1904_v58 }
 0x48a   : > { %2604 = vmatmul.mubr.msk.f32.vlgmr.msra.gmra.mxu1 %vm264_vm0, %v2699_v60 }
 0x48b   : > { %2606 = vmatprep.mubr.msk.f32.mxu1 %vm264_vm0, %v2700_v61 }
 0x48e   : > { %2607 = vmatmul.mubr.msk.f32.gmra.mxu1 %vm264_vm0, %v2701_v63 }
 0x48f   : > { %2609 = vmatprep.mubr.msk.f32.mxu1 %vm264_vm0, %v2702_v0 }
 0x492   : > { %2610 = vmatmul.mubr.msk.f32.gmra.mxu1 %vm264_vm0, %v2703_v3 }
 0x493   : > { %2612 = vmatprep.mubr.msk.f32.mxu1 %vm264_vm0, %v2704_v13 }
 0x496   : > { %2613 = vmatmul.mubr.msk.f32.gmra.mxu1 %vm264_vm0, %v2705_v4 }
 0x546   : > { %v1815_v5 = vpop.f32.mrf.mxu1 }
 0x547   : > { %v1819_v6 = vmul.f32 %v1815_v5, %v1815_v5 }
 0x548   : > { %v2598_v7 = vpop.f32.mrf.mxu1 }
 0x549   : > { %v1821_v8 = vrot.slane %v1819_v6, 7 }
 0x54a   : > { %v2605_v53 = vpop.f32.mrf.mxu1 }
 0x54b   : > { %v1823_v11 = vsub.f32 %v1815_v5, %v1821_v8  ;;  %v1999_v59 = vadd.f32 %v2605_v53, %v2443_v55 }
 0x54c   : > { %v1993_v30 = vpop.f32.mrf.mxu1 }
 0x54d   : > { %v1824_v12 = vadd.f32 1e-05, %v1823_v11  ;;  %v1994_v60 = vadd.f32 %v2443_v55, %v1993_v30 }
 0x54e   : > { %v2608_v19 = vpop.f32.mrf.mxu1 }
 0x54f   : > { %2662 = vrsqrt.f32 %v1824_v12  ;;  %v2009_v0 = vadd.f32 %v2608_v19, %v2443_v55 }
 0x550   : > { %v2003_v48 = vpop.f32.mrf.mxu1 }
 0x551   : > { %v2004_v3 = vadd.f32 %v2443_v55, %v2003_v48 }
 0x552   : > { %v2611_v54 = vpop.f32.mrf.mxu1 }
 0x553   : > { %v2019_v13 = vadd.f32 %v2611_v54, %v2443_v55 }
 0x554   : > { %v2013_v56 = vpop.f32.mrf.mxu1 }
 0x555   : > { %v2014_v7 = vadd.f32 %v2443_v55, %v2013_v56 }
 0x556   : > { %v2614_v4 = vpop.f32.mrf.mxu1 }
 0x557   : > { %v2029_v8 = vadd.f32 %v2614_v4, %v2443_v55 }
 0x558   : > { %v2023_v53 = vpop.f32.mrf.mxu1 }
 0x55c   : > { %v2663_v35 = vpop.eup %2662 }
 0x55d   : > { %v1827_v41 = vrot.slane %v2663_v35, 1 }
 0x55f   : > { %v1829_v46 = vmul.f32 %v1827_v41, %v1693_v37 }
 0x561   : > { %v1830_v15 = vmul.f32 %v1829_v46, %v1815_v5  ;;  %v1835_v20 = vrot.slane %v1829_v46, %v3237_v62 }
 0x563   : > { %v1831_v34 = vsub.f32 %v1694_v14, %v1830_v15  ;;  %v1837_v10 = vmul.f32 %v1835_v20, %v3635_v38  ;;  %v1836_v25 = vmul.f32 %v1835_v20, %v3637_v43  ;;  %v1839_v22 = vmul.f32 %v1835_v20, %v3643_v50 }
 0x564   : > { %v1838_v23 = vmul.f32 %v1835_v20, %v3639_v44  ;;  %v1841_v26 = vmul.f32 %v1835_v20, %v3660_v2  ;;  %v1840_v1 = vmul.f32 %v1835_v20, %v3651_v57  ;;  %v1843_v33 = vmul.f32 %v1835_v20, %v3684_v29 }
 0x565   : > { %v1847_v21 = vrot.slane %v1831_v34, %v3237_v62  ;;  %v1842_v43 = vmul.f32 %v1835_v20, %v3668_v9 }
 0x567   : > { %v1849_v24 = vadd.f32 %v1847_v21, %v1837_v10  ;;  %v1848_v27 = vadd.f32 %v1847_v21, %v1836_v25  ;;  %v1851_v31 = vadd.f32 %v1847_v21, %v1839_v22  ;;  %v3728_v17 = vadd.f32 %v1847_v21, %v1838_v23 }
 0x568   : > { %v3730_v38 = vadd.f32 %v1847_v21, %v1841_v26  ;;  %v3732_v18 = vadd.f32 %v1847_v21, %v1840_v1  ;;  %v3735_v28 = vadd.f32 %v1847_v21, %v1843_v33  ;;  %v3738_v29 = vadd.f32 %v1847_v21, %v1842_v43 }
 0x569   : > { %v1865_v50 = vmin.f32 %v1849_v24, 0.0  ;;  %v1864_v44 = vmin.f32 %v1848_v27, 0.0  ;;  %v1867_v2 = vmin.f32 %v1851_v31, 0.0  ;;  %v1866_v57 = vmin.f32 %v3728_v17, 0.0 }
 0x56a   : > { %v1869_v16 = vmin.f32 %v3730_v38, 0.0  ;;  %v1868_v42 = vmin.f32 %v3732_v18, 0.0  ;;  %v1871_v45 = vmin.f32 %v3735_v28, 0.0  ;;  %v1870_v47 = vmin.f32 %v3738_v29, 0.0 }
 0x56b   : > { %v1874_v32 = vmul.f32 1.442695, %v1865_v50  ;;  %v1872_v36 = vmul.f32 1.442695, %v1864_v44  ;;  %v1878_v39 = vmul.f32 1.442695, %v1867_v2  ;;  %v2024_v43 = vadd.f32 %v2443_v55, %v2023_v53 }
 0x56c   : > { %v1876_v40 = vmul.f32 1.442695, %v1866_v57  ;;  %v1882_v9 = vmul.f32 1.442695, %v1869_v16  ;;  %v1880_v49 = vmul.f32 1.442695, %v1868_v42 }
 0x56d   : > { %2664 = vpow2.f32 %v1874_v32  ;;  %v1886_v51 = vmul.f32 1.442695, %v1871_v45  ;;  %v1884_v52 = vmul.f32 1.442695, %v1870_v47  ;;  %vm1857_vm0 = vcmp.gt.f32.partialorder %v1849_v24, 0.0 }
 0x56e   : > { %2666 = vpow2.f32 %v1872_v36  ;;  %vm1856_vm9 = vcmp.gt.f32.partialorder %v1848_v27, 0.0  ;;  %vm1859_vm12 = vcmp.gt.f32.partialorder %v1851_v31, 0.0  ;;  %vm1858_vm13 = vcmp.gt.f32.partialorder %v3728_v17, 0.0 }
 0x56f   : > { %2668 = vpow2.f32 %v1878_v39  ;;  %vm1861_vm14 = vcmp.gt.f32.partialorder %v3730_v38, 0.0  ;;  %vm1860_vm15 = vcmp.gt.f32.partialorder %v3732_v18, 0.0  ;;  %vm1863_vm1 = vcmp.gt.f32.partialorder %v3735_v28, 0.0 }
 0x570   : > { %2670 = vpow2.f32 %v1876_v40  ;;  %vm1862_vm2 = vcmp.gt.f32.partialorder %v3738_v29, 0.0 }
 0x571   : > { %2672 = vpow2.f32 %v1882_v9 }
 0x572   : > { %2674 = vpow2.f32 %v1880_v49 }
 0x573   : > { %2676 = vpow2.f32 %v1886_v51 }
 0x574   : > { %2678 = vpow2.f32 %v1884_v52 }
 0x57a   : > { %v2665_v58 = vpop.eup %2664 }
 0x57b   : > { %v2667_v61 = vpop.eup %2666  ;;  %v2436_v63 = vadd.f32 -1.0, %v2665_v58 }
 0x57c   : > { %v2669_v5 = vpop.eup %2668  ;;  %v2435_v6 = vadd.f32 -1.0, %v2667_v61 }
 0x57d   : > { %v2671_v11 = vpop.eup %2670  ;;  %v1897_v12 = vsel %vm1857_vm0, %v1849_v24, %v2436_v63  ;;  %v2438_v35 = vadd.f32 -1.0, %v2669_v5  ;;  %vm2283_vm0 = vcmask 523264  }
 0x57e   : > { %v2673_v37 = vpop.eup %2672  ;;  %v3747_v41 = vadd.f32 %v1999_v59, %v1897_v12  ;;  %v1896_v46 = vsel %vm1856_vm9, %v1848_v27, %v2435_v6  ;;  %v2437_v14 = vadd.f32 -1.0, %v2671_v11 }
 0x57f   : > { %v3750_v15 = vadd.f32 %v1994_v60, %v1896_v46  ;;  %v1899_v20 = vsel %vm1859_vm12, %v1851_v31, %v2438_v35  ;;  %v2440_v34 = vadd.f32 -1.0, %v2673_v37  ;;  %v2675_v23 = vpop.eup %2674 }
 0x580   : > { %v2043_v10 = vsel %vm807_vm8, %v3747_v41, 0.0  ;;  %v2064_v21 = vmul.f32 %v3747_v41, %v3747_v41  ;;  %v3757_v25 = vadd.f32 %v2009_v0, %v1899_v20  ;;  %v1898_v22 = vsel %vm1858_vm13, %v3728_v17, %v2437_v14  ;;  %v2677_v27 = vpop.eup %2676 }
 0x581   : > { %v2042_v26 = vsel %vm807_vm8, %v3750_v15, 0.0  ;;  %v2063_v1 = vmul.f32 %v3750_v15, %v3750_v15  ;;  %v3764_v33 = vadd.f32 %v2004_v3, %v1898_v22  ;;  %v1901_v24 = vsel %vm1861_vm14, %v3730_v38, %v2440_v34  ;;  %v2679_v50 = vpop.eup %2678 }
 0x582   : > { %v2072_v30 = vsel %vm807_vm8, %v2064_v21, 0.0  ;;  %v2044_v31 = vadd.f32 %v2043_v10, %v2042_v26  ;;  %v2066_v44 = vmul.f32 %v3757_v25, %v3757_v25  ;;  %v3776_v36 = vadd.f32 %v2019_v13, %v1901_v24 }
 0x583   : > { %v2071_v17 = vsel %vm807_vm8, %v2063_v1, 0.0  ;;  %v2045_v2 = vsel %vm807_vm8, %v3764_v33, 0.0  ;;  %v2065_v57 = vmul.f32 %v3764_v33, %v3764_v33  ;;  %v2439_v19 = vadd.f32 -1.0, %v2675_v23 }
 0x584   : > { %v2073_v38 = vadd.f32 %v2072_v30, %v2071_v17  ;;  %v2046_v32 = vadd.f32 %v2045_v2, %v2044_v31  ;;  %v2047_v16 = vsel %vm807_vm8, %v3757_v25, 0.0  ;;  %v2442_v40 = vadd.f32 -1.0, %v2677_v27 }
 0x585   : > { %v2074_v39 = vsel %vm807_vm8, %v2065_v57, 0.0  ;;  %v1900_v9 = vsel %vm1860_vm15, %v3732_v18, %v2439_v19  ;;  %v2441_v47 = vadd.f32 -1.0, %v2679_v50  ;;  %v2076_v48 = vsel %vm807_vm8, %v2066_v44, 0.0  ;;  %v2040_v57 = vld [vmem:[%s3845_s5 + $0x7] sm:$0x1] }
 0x586   : > { %v2075_v42 = vadd.f32 %v2074_v39, %v2073_v38  ;;  %v2048_v45 = vadd.f32 %v2047_v16, %v2046_v32  ;;  %v3786_v49 = vadd.f32 %v2014_v7, %v1900_v9  ;;  %v1903_v51 = vsel %vm1863_vm1, %v3735_v28, %v2442_v40  ;;  %v2041_v19 = vld [vmem:[%s3845_s5 + $0x8] sm:$0x1] }
 0x587   : > { %v2068_v52 = vmul.f32 %v3776_v36, %v3776_v36  ;;  %v1902_v55 = vsel %vm1862_vm2, %v3738_v29, %v2441_v47  ;;  %v3797_v58 = vadd.f32 %v2029_v8, %v1903_v51  ;;  %v2051_v28 = vsel %vm807_vm8, %v3776_v36, 0.0 }
 0x588   : > { %v2077_v54 = vadd.f32 %v2076_v48, %v2075_v42  ;;  %v2049_v56 = vsel %vm807_vm8, %v3786_v49, 0.0  ;;  %v2067_v18 = vmul.f32 %v3786_v49, %v3786_v49  ;;  %v3799_v59 = vadd.f32 %v2024_v43, %v1902_v55 }
 0x589   : > { %v2050_v60 = vadd.f32 %v2049_v56, %v2048_v45  ;;  %v2080_v3 = vsel %vm807_vm8, %v2068_v52, 0.0  ;;  %v2070_v13 = vmul.f32 %v3797_v58, %v3797_v58  ;;  %v2055_v7 = vsel %vm807_vm8, %v3797_v58, 0.0 }
 0x58a   : > { %v2078_v61 = vsel %vm807_vm8, %v2067_v18, 0.0  ;;  %v2069_v63 = vmul.f32 %v3799_v59, %v3799_v59  ;;  %v2053_v4 = vsel %vm807_vm8, %v3799_v59, 0.0 }
 0x58b   : > { %v2079_v29 = vadd.f32 %v2078_v61, %v2077_v54  ;;  %v2052_v0 = vadd.f32 %v2051_v28, %v2050_v60  ;;  %v2084_v35 = vsel %vm807_vm8, %v2070_v13, 0.0 }
 0x58c   : > { %v2082_v8 = vsel %vm807_vm8, %v2069_v63, 0.0 }
 0x58d   : > { %v2054_v5 = vadd.f32 %v2053_v4, %v2052_v0  ;;  %v2081_v6 = vadd.f32 %v2080_v3, %v2079_v29 }
 0x58f   : > { %v2056_v11 = vadd.f32 %v2055_v7, %v2054_v5  ;;  %v2083_v12 = vadd.f32 %v2082_v8, %v2081_v6 }
 0x591   : > { %v2057_v37 = vrot.slane %v2056_v11, 4  ;;  %v2085_v46 = vadd.f32 %v2084_v35, %v2083_v12 }
 0x593   : > { %v2058_v14 = vadd.f32 %v2057_v37, %v2056_v11  ;;  %v2086_v20 = vrot.slane %v2085_v46, 4 }
 0x595   : > { %v2059_v34 = vrot.slane %v2058_v14, 2  ;;  %v2087_v53 = vadd.f32 %v2086_v20, %v2085_v46 }
 0x597   : > { %v2060_v10 = vadd.f32 %v2059_v34, %v2058_v14  ;;  %v2088_v21 = vrot.slane %v2087_v53, 2 }
 0x599   : > { %v2061_v22 = vrot.slane %v2060_v10, 1  ;;  %v2089_v23 = vadd.f32 %v2088_v21, %v2087_v53 }
 0x59b   : > { %v2090_v26 = vrot.slane %v2089_v23, 1  ;;  %v2062_v1 = vadd.f32 %v2061_v22, %v2060_v10 }
 0x59d   : > { %v2091_v24 = vadd.f32 %v2090_v26, %v2089_v23 }
 0x59f   : > { %v2092_v27 = vsel %vm858_vm10, %v2062_v1, %v2091_v24 }
 0x5a0   : > { %2624 = vmatmul.mubr.msk.f32.vlgmr.msra.gmra.mxu0 %vm807_vm8, %v2092_v27 }
 0x660   : > { %v2162_v30 = vpop.f32.mrf.mxu0 }
 0x661   : > { %v2166_v31 = vmul.f32 %v2162_v30, %v2162_v30 }
 0x662   : > { %v2625_v43 = vpop.f32.mrf.mxu0 }
 0x663   : > { %v2168_v50 = vrot.slane %v2166_v31, 7 }
 0x665   : > { %v2170_v17 = vsub.f32 %v2162_v30, %v2168_v50 }
 0x667   : > { %v2171_v44 = vadd.f32 1e-05, %v2170_v17 }
 0x669   : > { %2680 = vrsqrt.f32 %v2171_v44 }
 0x676   : > { %v2681_v2 = vpop.eup %2680 }
 0x677   : > { %v2174_v38 = vrot.slane %v2681_v2, 1 }
 0x679   : > { %v2176_v32 = vmul.f32 %v2174_v38, %v2040_v57 }
 0x67b   : > { %v2177_v16 = vmul.f32 %v2176_v32, %v2162_v30  ;;  %v2182_v39 = vrot.slane %v2176_v32, %v3237_v62 }
 0x67d   : > { %v2178_v40 = vsub.f32 %v2041_v19, %v2177_v16  ;;  %v2183_v9 = vmul.f32 %v2182_v39, %v3750_v15  ;;  %v2184_v45 = vmul.f32 %v2182_v39, %v3747_v41  ;;  %v2185_v47 = vmul.f32 %v2182_v39, %v3764_v33 }
 0x67e   : > { %v2186_v54 = vmul.f32 %v2182_v39, %v3757_v25  ;;  %v2187_v63 = vmul.f32 %v2182_v39, %v3786_v49  ;;  %v2188_v41 = vmul.f32 %v2182_v39, %v3776_v36  ;;  %v2189_v25 = vmul.f32 %v2182_v39, %v3799_v59 }
 0x67f   : > { %v2194_v42 = vrot.slane %v2178_v40, %v3237_v62  ;;  %v2190_v6 = vmul.f32 %v2182_v39, %v3797_v58 }
 0x681   : > { %v2195_v48 = vadd.f32 %v2194_v42, %v2183_v9  ;;  %v2196_v51 = vadd.f32 %v2194_v42, %v2184_v45  ;;  %v2197_v52 = vadd.f32 %v2194_v42, %v2185_v47  ;;  %v2198_v18 = vadd.f32 %v2194_v42, %v2186_v54 }
 0x682   : > { %v2199_v29 = vadd.f32 %v2194_v42, %v2187_v63  ;;  %v2200_v3 = vadd.f32 %v2194_v42, %v2188_v41  ;;  %v2201_v5 = vadd.f32 %v2194_v42, %v2189_v25  ;;  %v2202_v49 = vadd.f32 %v2194_v42, %v2190_v6 }
 0x683   : > { %v2211_v55 = vmin.f32 %v2195_v48, 0.0  ;;  %v2212_v56 = vmin.f32 %v2196_v51, 0.0  ;;  %v2213_v60 = vmin.f32 %v2197_v52, 0.0  ;;  %v2214_v15 = vmin.f32 %v2198_v18, 0.0 }
 0x684   : > { %v2215_v0 = vmin.f32 %v2199_v29, 0.0  ;;  %v2216_v4 = vmin.f32 %v2200_v3, 0.0  ;;  %v2217_v8 = vmin.f32 %v2201_v5, 0.0  ;;  %vm2203_vm8 = vcmp.gt.f32.partialorder %v2195_v48, 0.0 }
 0x685   : > { %v2219_v28 = vmul.f32 1.442695, %v2211_v55  ;;  %v2221_v61 = vmul.f32 1.442695, %v2212_v56  ;;  %v2223_v62 = vmul.f32 1.442695, %v2213_v60 }
 0x686   : > { %v2225_v33 = vmul.f32 1.442695, %v2214_v15  ;;  %v2227_v13 = vmul.f32 1.442695, %v2215_v0  ;;  %v2229_v7 = vmul.f32 1.442695, %v2216_v4 }
 0x687   : > { %2682 = vpow2.f32 %v2219_v28  ;;  %v2218_v36 = vmin.f32 %v2202_v49, 0.0  ;;  %v2231_v14 = vmul.f32 1.442695, %v2217_v8  ;;  %vm2204_vm10 = vcmp.gt.f32.partialorder %v2196_v51, 0.0 }
 0x688   : > { %2684 = vpow2.f32 %v2221_v61  ;;  %vm2205_vm3 = vcmp.gt.f32.partialorder %v2197_v52, 0.0  ;;  %vm2206_vm4 = vcmp.gt.f32.partialorder %v2198_v18, 0.0  ;;  %vm2207_vm5 = vcmp.gt.f32.partialorder %v2199_v29, 0.0 }
 0x689   : > { %2686 = vpow2.f32 %v2223_v62  ;;  %v2233_v58 = vmul.f32 1.442695, %v2218_v36  ;;  %vm2208_vm6 = vcmp.gt.f32.partialorder %v2200_v3, 0.0  ;;  %vm2209_vm7 = vcmp.gt.f32.partialorder %v2201_v5, 0.0 }
 0x68a   : > { %2688 = vpow2.f32 %v2225_v33  ;;  %vm2210_vm11 = vcmp.gt.f32.partialorder %v2202_v49, 0.0 }
 0x68b   : > { %2690 = vpow2.f32 %v2227_v13 }
 0x68c   : > { %2692 = vpow2.f32 %v2229_v7 }
 0x68d   : > { %2694 = vpow2.f32 %v2231_v14 }
 0x68e   : > { %2696 = vpow2.f32 %v2233_v58 }
 0x694   : > { %v2683_v11 = vpop.eup %2682 }
 0x695   : > { %v2685_v12 = vpop.eup %2684  ;;  %v2453_v35 = vadd.f32 -1.0, %v2683_v11 }
 0x696   : > { %v2454_v46 = vadd.f32 -1.0, %v2685_v12  ;;  %v2687_v59 = vpop.eup %2686 }
 0x697   : > { %v2243_v37 = vsel %vm2203_vm8, %v2195_v48, %v2453_v35  ;;  %v2455_v34 = vadd.f32 -1.0, %v2687_v59  ;;  %v2689_v53 = vpop.eup %2688 }
 0x698   : > { %2251 = vxpose.xlu0.b32.start [1/8] (short) (narrow) %v2243_v37, 32  ;;  %v2244_v20 = vsel %vm2204_vm10, %v2196_v51, %v2454_v46  ;;  %v2456_v21 = vadd.f32 -1.0, %v2689_v53  ;;  %v2691_v22 = vpop.eup %2690 }
 0x699   : > { %v2245_v10 = vsel %vm2205_vm3, %v2197_v52, %v2455_v34  ;;  %v2457_v26 = vadd.f32 -1.0, %v2691_v22  ;;  %v2693_v1 = vpop.eup %2692 }
 0x69a   : > { %v2246_v23 = vsel %vm2206_vm4, %v2198_v18, %v2456_v21  ;;  %v2458_v27 = vadd.f32 -1.0, %v2693_v1  ;;  %v2695_v30 = vpop.eup %2694 }
 0x69b   : > { %v2247_v24 = vsel %vm2207_vm5, %v2199_v29, %v2457_v26  ;;  %v2459_v43 = vadd.f32 -1.0, %v2695_v30  ;;  %v2697_v50 = vpop.eup %2696 }
 0x69c   : > { %2252 = vxpose.xlu0.b32.cont [2/8] (short) (narrow) %v2244_v20, 32  ;;  %v2248_v31 = vsel %vm2208_vm6, %v2200_v3, %v2458_v27  ;;  %v2460_v44 = vadd.f32 -1.0, %v2697_v50 }
 0x69d   : > { %v2249_v17 = vsel %vm2209_vm7, %v2201_v5, %v2459_v43 }
 0x69e   : > { %v2250_v2 = vsel %vm2210_vm11, %v2202_v49, %v2460_v44 }
 0x6a0   : > { %2253 = vxpose.xlu0.b32.cont [3/8] (short) (narrow) %v2245_v10, 32 }
 0x6a4   : > { %2254 = vxpose.xlu0.b32.cont [4/8] (short) (narrow) %v2246_v23, 32 }
 0x6a8   : > { %2255 = vxpose.xlu0.b32.cont [5/8] (short) (narrow) %v2247_v24, 32 }
 0x6ac   : > { %2256 = vxpose.xlu0.b32.cont [6/8] (short) (narrow) %v2248_v31, 32 }
 0x6b0   : > { %2257 = vxpose.xlu0.b32.cont [7/8] (short) (narrow) %v2249_v17, 32 }
 0x6b4   : > { %2258 = vxpose.xlu0.b32.end [8/8] (short) (narrow) %v2250_v2, 32 }
 0x714   : > { %v2267_v57 = vpop.trf.xlu0 }
 0x715   : > { %2284 = vst.msk [vmem:[%s251_s25] sm:$0xff] %vm2283_vm0, %v2267_v57 }
 0x718   : > { %v2268_v38 = vpop.trf.xlu0 }
 0x719   : > { %2285 = vst.msk [vmem:[%s251_s25 + $0x8] sm:$0xff] %vm2283_vm0, %v2268_v38 }
 0x71c   : > { %v2269_v32 = vpop.trf.xlu0 }
 0x71d   : > { %2286 = vst.msk [vmem:[%s251_s25 + $0x10] sm:$0xff] %vm2283_vm0, %v2269_v32 }
 0x720   : > { %v2270_v19 = vpop.trf.xlu0 }
 0x721   : > { %2287 = vst.msk [vmem:[%s251_s25 + $0x18] sm:$0xff] %vm2283_vm0, %v2270_v19 }
 0x722 PF: > { %s16_s21 = sadd.s32 1, %s2712_s21  }
 0x723   : > { %p13_p4 = scmp.ge.s32.totalorder %s16_s21, 4  }
 0x725   :  { %15 = sbr.rel (!%p13_p4) target bundleno = 1 (0x1), region = 82 }

</bundles_post_ra>
